<compile_context>
chip_gen: v6e
topology: v6e:2x2x1
jax: 0.10.0
libtpu: 0.0.40
codegen_flags: <defaults>
</compile_context>

<pallas_src>
import jax
import jax.numpy as jnp
from jax.experimental import pallas as pl
from jax.experimental.pallas import tpu as pltpu


TM = 256        # node row tile   (256 matches v6e/v7x MXU width)
TK = 256        # node contraction tile
VMEM_LIMIT = 48 * 1024 * 1024   # explicit scoped-VMEM budget, < 64 MiB v7x physical


def _round_up(x, m):
    return (x + m - 1) // m * m


# ----------------------------- Pallas kernels ------------------------------

def _theta_edge_kernel(x_ref, wt_ref, b_ref, dg_ref, dv_ref, ht_ref, esc_ref,
                       z_ref, y_ref, yacc_ref):
    """Per node-row tile i: theta, Z = dg*X0 (bf16), hyperedge aggregate Y."""
    i = pl.program_id(0)

    x0 = jnp.dot(x_ref[...], wt_ref[...],
                 preferred_element_type=jnp.float32) + b_ref[...]

    # The only node-feature stream kernel B consumes (pre-scaled, bf16).
    z_ref[...] = (dg_ref[...] * x0).astype(jnp.bfloat16)

    @pl.when(i == 0)
    def _():
        yacc_ref[...] = jnp.zeros_like(yacc_ref)

    zv = (dv_ref[...] * x0).astype(jnp.bfloat16)
    yacc_ref[...] += jnp.dot(ht_ref[...], zv,
                             preferred_element_type=jnp.float32)

    @pl.when(i == pl.num_programs(0) - 1)
    def _():
        # per-hyperedge scale w_e / d_e applied once after the full reduction
        y_ref[...] = (esc_ref[...] * yacc_ref[...]).astype(jnp.bfloat16)


def _smooth_kernel(a_ref, z_ref, dgi_ref, h_ref, y_ref, dvi_ref, o_ref):
    """grid=(row tile i, k tile): fused GCN + HGNN smoothing + mean + ReLU.
       A already contains the +I self-loop and is stored int8 (exact 0/1)."""
    k = pl.program_id(1)

    @pl.when(k == 0)
    def _():
        o_ref[...] = jnp.zeros_like(o_ref)

    o_ref[...] += jnp.dot(a_ref[...].astype(jnp.bfloat16), z_ref[...],
                          preferred_element_type=jnp.float32)

    @pl.when(k == pl.num_programs(1) - 1)
    def _():
        x_g = dgi_ref[...] * o_ref[...]
        x_hg = dvi_ref[...] * jnp.dot(h_ref[...], y_ref[...],
                                      preferred_element_type=jnp.float32)
        o_ref[...] = jnp.maximum(0.5 * (x_g + x_hg), 0.0)


# ------------------------------- wrapper ------------------------------------

@jax.jit
def gcn_hgnnconv_forward(x, adj, incidence, w, b):
    """x:(N,Cin)  adj:(N,N)  incidence:(N,M)  w:(Cout,Cin)  b:(Cout,) -> (N,Cout)."""
    n, c_in = x.shape
    c_out = w.shape[0]
    m = incidence.shape[1]

    n_p = _round_up(n, max(TM, TK))

    f32 = jnp.float32
    bf16 = jnp.bfloat16

    # --- degree / scale vectors (tiny, plain JAX; isolated vertices -> 0) ---
    dg = 1.0 / jnp.sqrt(jnp.sum(adj, axis=1) + 1.0)          # degrees of A + I
    w_e = jnp.ones((m,), f32)                                 # dhg default edge weights
    dv_deg = incidence @ w_e
    dv = jnp.where(dv_deg > 0, 1.0 / jnp.sqrt(dv_deg), 0.0)
    d_e = jnp.sum(incidence, axis=0)
    esc = jnp.where(d_e > 0, w_e / d_e, 0.0)

    # --- pack operands (no feature/hyperedge-axis padding; rows padded to tile) ---
    xp = jnp.zeros((n_p, c_in), bf16).at[:n].set(x.astype(bf16))
    wtp = w.T.astype(bf16)                                    # (c_in, c_out)
    bp = b.reshape(1, c_out).astype(f32)
    # A + I folded, int8 storage (entries exactly 0/1): halves the O(N^2) stream.
    adjp = jnp.zeros((n_p, n_p), jnp.int8).at[:n, :n].set(adj.astype(jnp.int8))
    adjp = adjp.at[jnp.arange(n), jnp.arange(n)].set(1)
    hp = jnp.zeros((n_p, m), bf16).at[:n].set(incidence.astype(bf16))
    htp = jnp.zeros((m, n_p), bf16).at[:, :n].set(incidence.T.astype(bf16))
    dgp = jnp.zeros((n_p, 1), f32).at[:n, 0].set(dg)
    dvp = jnp.zeros((n_p, 1), f32).at[:n, 0].set(dv)
    escp = esc.reshape(m, 1).astype(f32)

    grid_rows = n_p // TM
    grid_k = n_p // TK

    # --- kernel A: theta + Z = dg*X0 (bf16) + hyperedge aggregate Y (bf16) ---
    z_p, y_p = pl.pallas_call(
        _theta_edge_kernel,
        out_shape=(jax.ShapeDtypeStruct((n_p, c_out), bf16),
                   jax.ShapeDtypeStruct((m, c_out), bf16)),
        grid_spec=pltpu.PrefetchScalarGridSpec(
            num_scalar_prefetch=0,
            grid=(grid_rows,),
            in_specs=[
                pl.BlockSpec((TM, c_in), lambda i: (i, 0)),     # X row tile (bf16)
                pl.BlockSpec((c_in, c_out), lambda i: (0, 0)),  # W^T (bf16)
                pl.BlockSpec((1, c_out), lambda i: (0, 0)),     # b
                pl.BlockSpec((TM, 1), lambda i: (i, 0)),        # dg row tile
                pl.BlockSpec((TM, 1), lambda i: (i, 0)),        # dv row tile
                pl.BlockSpec((m, TM), lambda i: (0, i)),        # H^T column tile (bf16)
                pl.BlockSpec((m, 1), lambda i: (0, 0)),         # w_e/d_e
            ],
            out_specs=[
                pl.BlockSpec((TM, c_out), lambda i: (i, 0)),    # Z (bf16)
                pl.BlockSpec((m, c_out), lambda i: (0, 0)),     # Y (bf16, written once)
            ],
            scratch_shapes=[pltpu.VMEM((m, c_out), jnp.float32)]),  # f32 Y accumulator
        compiler_params=pltpu.CompilerParams(
            dimension_semantics=("arbitrary",),
            vmem_limit_bytes=VMEM_LIMIT),
    )(xp, wtp, bp, dgp, dvp, htp, escp)

    # --- kernel B: fused GCN + HGNN smoothing + mean + ReLU ---
    out_p = pl.pallas_call(
        _smooth_kernel,
        out_shape=jax.ShapeDtypeStruct((n_p, c_out), f32),
        grid_spec=pltpu.PrefetchScalarGridSpec(
            num_scalar_prefetch=0,
            grid=(grid_rows, grid_k),
            in_specs=[
                pl.BlockSpec((TM, TK), lambda i, k: (i, k)),      # (A+I) block (int8)
                pl.BlockSpec((TK, c_out), lambda i, k: (k, 0)),   # Z[k] (bf16)
                pl.BlockSpec((TM, 1), lambda i, k: (i, 0)),       # dg[i]
                pl.BlockSpec((TM, m), lambda i, k: (i, 0)),       # H[i, :] (bf16)
                pl.BlockSpec((m, c_out), lambda i, k: (0, 0)),    # Y (bf16, resident)
                pl.BlockSpec((TM, 1), lambda i, k: (i, 0)),       # dv[i]
            ],
            out_specs=pl.BlockSpec((TM, c_out), lambda i, k: (i, 0)),
        ),
        compiler_params=pltpu.CompilerParams(
            dimension_semantics=("parallel", "arbitrary"),
            vmem_limit_bytes=VMEM_LIMIT),
    )(adjp, z_p, dgp, hp, y_p, dvp)

    return out_p[:n]


# --------------------------- pure-JAX reference ------------------------------

def _reference_forward(x, adj, incidence, w, b):
    n = x.shape[0]
    m = incidence.shape[1]
    x0 = x @ w.T + b
    a_hat = adj + jnp.eye(n, dtype=x.dtype)
    dg = 1.0 / jnp.sqrt(jnp.sum(a_hat, axis=1))
    x_g = dg[:, None] * (a_hat @ (dg[:, None] * x0))
    w_e = jnp.ones((m,), x.dtype)
    dv_deg = incidence @ w_e
    dv = jnp.where(dv_deg > 0, 1.0 / jnp.sqrt(dv_deg), 0.0)
    d_e = jnp.sum(incidence, axis=0)
    esc = jnp.where(d_e > 0, w_e / d_e, 0.0)
    y = esc[:, None] * (incidence.T @ (dv[:, None] * x0))
    x_hg = dv[:, None] * (incidence @ y)
    return jnp.maximum(0.5 * (x_g + x_hg), 0.0)


# --------------------------------- main --------------------------------------

if __name__ == "__main__":
    key = jax.random.PRNGKey(0)
    k_x, k_w, k_b, k_e, k_h = jax.random.split(key, 5)

    N = 512       # vertices (2 row tiles x 2 k tiles -> exercises the pipeline)
    C_IN = 16     # in_channels
    C_OUT = 32    # out_channels
    M = 24        # hyperedges
    E = 2048      # graph edges

    # Node features.
    x = jax.random.normal(k_x, (N, C_IN), dtype=jnp.float32)

    # theta = nn.Linear(C_IN, C_OUT): weight (C_OUT, C_IN), bias (C_OUT,)
    bound = 1.0 / jnp.sqrt(jnp.float32(C_IN))
    w = jax.random.uniform(k_w, (C_OUT, C_IN), jnp.float32, -bound, bound)
    b = jax.random.uniform(k_b, (C_OUT,), jnp.float32, -bound, bound)

    # Simple graph g: random symmetric 0/1 adjacency, no self loops.
    src = jax.random.randint(k_e, (E,), 0, N)
    off = jax.random.randint(jax.random.fold_in(k_e, 1), (E,), 1, N)
    dst = (src + off) % N
    adj = jnp.zeros((N, N), jnp.float32).at[src, dst].max(1.0)
    adj = jnp.maximum(adj, adj.T)

    # Hypergraph hg: dense 0/1 incidence, every hyperedge gets >= 2 vertices.
    incidence = (jax.random.uniform(k_h, (N, M)) < 0.05).astype(jnp.float32)
    cols = jnp.arange(M)
    incidence = incidence.at[2 * cols, cols].set(1.0)
    incidence = incidence.at[2 * cols + 1, cols].set(1.0)

    out = gcn_hgnnconv_forward(x, adj, incidence, w, b)
    out = jax.block_until_ready(out)

    ref = _reference_forward(x, adj, incidence, w, b)

    assert out.shape == (N, C_OUT)
    assert bool(jnp.all(jnp.isfinite(out)))
    assert bool(jnp.all(out >= 0.0))          # ReLU output
    max_err = jnp.max(jnp.abs(out - ref))     # bf16 operand rounding only
    assert bool(max_err < 6e-2), f"max abs error {max_err}"
    print("KERNEL_OK")
</pallas_src>

<mosaic_0001>
module attributes {stable_mosaic.version = 11 : i64} {
  func.func @_theta_edge_kernel(%arg0: i32, %arg1: memref<256x16xbf16, #tpu.memory_space<vmem>>, %arg2: memref<16x32xbf16, #tpu.memory_space<vmem>>, %arg3: memref<1x32xf32, #tpu.memory_space<vmem>>, %arg4: memref<256x1xf32, #tpu.memory_space<vmem>>, %arg5: memref<256x1xf32, #tpu.memory_space<vmem>>, %arg6: memref<24x256xbf16, #tpu.memory_space<vmem>>, %arg7: memref<24x1xf32, #tpu.memory_space<vmem>>, %arg8: memref<256x32xbf16, #tpu.memory_space<vmem>>, %arg9: memref<24x32xbf16, #tpu.memory_space<vmem>>, %arg10: memref<24x32xf32, #tpu.memory_space<vmem>>) attributes {dimension_semantics = [#tpu.dimension_semantics<arbitrary>], iteration_bounds = array<i64: 2>, scalar_prefetch = 0 : i64, scratch_operands = 1 : i64, tpu.core_type = #tpu.core_type<tc>, window_params = [{transform_indices = @transform_0, window_bounds = array<i64: 256, 16>}, {pipeline_mode = #tpu.pipeline_mode<synchronous>, transform_indices = @transform_1, window_bounds = array<i64: 16, 32>}, {pipeline_mode = #tpu.pipeline_mode<synchronous>, transform_indices = @transform_2, window_bounds = array<i64: 1, 32>}, {transform_indices = @transform_3, window_bounds = array<i64: 256, 1>}, {transform_indices = @transform_4, window_bounds = array<i64: 256, 1>}, {transform_indices = @transform_5, window_bounds = array<i64: 24, 256>}, {pipeline_mode = #tpu.pipeline_mode<synchronous>, transform_indices = @transform_6, window_bounds = array<i64: 24, 1>}, {transform_indices = @transform_7, window_bounds = array<i64: 256, 32>}, {pipeline_mode = #tpu.pipeline_mode<synchronous>, transform_indices = @transform_8, window_bounds = array<i64: 24, 32>}]} {
    %c0 = arith.constant 0 : index
    %c0_0 = arith.constant 0 : index
    %0 = vector.load %arg1[%c0, %c0_0] : memref<256x16xbf16, #tpu.memory_space<vmem>>, vector<256x16xbf16>
    %c0_1 = arith.constant 0 : index
    %c0_2 = arith.constant 0 : index
    %1 = vector.load %arg2[%c0_1, %c0_2] : memref<16x32xbf16, #tpu.memory_space<vmem>>, vector<16x32xbf16>
    %cst = arith.constant dense<0.000000e+00> : vector<256x32xf32>
    %2 = tpu.matmul %0, %1, %cst {dimension_numbers = #tpu.dot_dimension_numbers<[1], [0], [0], [1], [0, 0, 1, 1], [], []>} : vector<256x16xbf16>, vector<16x32xbf16>, vector<256x32xf32> -> vector<256x32xf32>
    %c0_3 = arith.constant 0 : index
    %c0_4 = arith.constant 0 : index
    %3 = vector.load %arg3[%c0_3, %c0_4] : memref<1x32xf32, #tpu.memory_space<vmem>>, vector<1x32xf32>
    %4 = vector.broadcast %3 : vector<1x32xf32> to vector<256x32xf32>
    %5 = arith.addf %2, %4 : vector<256x32xf32>
    %c0_5 = arith.constant 0 : index
    %c0_6 = arith.constant 0 : index
    %6 = vector.load %arg4[%c0_5, %c0_6] : memref<256x1xf32, #tpu.memory_space<vmem>>, vector<256x1xf32>
    %7 = vector.broadcast %6 : vector<256x1xf32> to vector<256x32xf32>
    %8 = arith.mulf %7, %5 : vector<256x32xf32>
    %9 = arith.truncf %8 : vector<256x32xf32> to vector<256x32xbf16>
    %c0_7 = arith.constant 0 : index
    %c0_8 = arith.constant 0 : index
    %10 = vector.load %arg8[%c0_7, %c0_8] : memref<256x32xbf16, #tpu.memory_space<vmem>>, vector<256x32xbf16>
    tpu.vector_store %arg8[%c0_7, %c0_8], %9 {strides = array<i32>} : memref<256x32xbf16, #tpu.memory_space<vmem>>, vector<256x32xbf16>,
    %c0_i32 = arith.constant 0 : i32
    %11 = arith.cmpi eq, %arg0, %c0_i32 : i32
    %12 = arith.extui %11 : i1 to i32
    %c0_i32_9 = arith.constant 0 : i32
    %13 = arith.cmpi ne, %12, %c0_i32_9 : i32
    scf.if %13 {
      %cst_20 = arith.constant 0.000000e+00 : f32
      %26 = vector.broadcast %cst_20 : f32 to vector<24x32xf32>
      %c0_21 = arith.constant 0 : index
      %c0_22 = arith.constant 0 : index
      %27 = vector.load %arg10[%c0_21, %c0_22] : memref<24x32xf32, #tpu.memory_space<vmem>>, vector<24x32xf32>
      tpu.vector_store %arg10[%c0_21, %c0_22], %26 {strides = array<i32>} : memref<24x32xf32, #tpu.memory_space<vmem>>, vector<24x32xf32>,
    } else {
    }
    %c0_10 = arith.constant 0 : index
    %c0_11 = arith.constant 0 : index
    %14 = vector.load %arg5[%c0_10, %c0_11] : memref<256x1xf32, #tpu.memory_space<vmem>>, vector<256x1xf32>
    %15 = vector.broadcast %14 : vector<256x1xf32> to vector<256x32xf32>
    %16 = arith.mulf %15, %5 : vector<256x32xf32>
    %17 = arith.truncf %16 : vector<256x32xf32> to vector<256x32xbf16>
    %c0_12 = arith.constant 0 : index
    %c0_13 = arith.constant 0 : index
    %18 = vector.load %arg10[%c0_12, %c0_13] : memref<24x32xf32, #tpu.memory_space<vmem>>, vector<24x32xf32>
    %c0_14 = arith.constant 0 : index
    %c0_15 = arith.constant 0 : index
    %19 = vector.load %arg6[%c0_14, %c0_15] : memref<24x256xbf16, #tpu.memory_space<vmem>>, vector<24x256xbf16>
    %cst_16 = arith.constant dense<0.000000e+00> : vector<24x32xf32>
    %20 = tpu.matmul %19, %17, %cst_16 {dimension_numbers = #tpu.dot_dimension_numbers<[1], [0], [0], [1], [0, 0, 1, 1], [], []>} : vector<24x256xbf16>, vector<256x32xbf16>, vector<24x32xf32> -> vector<24x32xf32>
    %21 = arith.addf %18, %20 : vector<24x32xf32>
    %c0_17 = arith.constant 0 : index
    %c0_18 = arith.constant 0 : index
    %22 = vector.load %arg10[%c0_17, %c0_18] : memref<24x32xf32, #tpu.memory_space<vmem>>, vector<24x32xf32>
    tpu.vector_store %arg10[%c0_17, %c0_18], %21 {strides = array<i32>} : memref<24x32xf32, #tpu.memory_space<vmem>>, vector<24x32xf32>,
    %c1_i32 = arith.constant 1 : i32
    %23 = arith.cmpi eq, %arg0, %c1_i32 : i32
    %24 = arith.extui %23 : i1 to i32
    %c0_i32_19 = arith.constant 0 : i32
    %25 = arith.cmpi ne, %24, %c0_i32_19 : i32
    scf.if %25 {
      %c0_20 = arith.constant 0 : index
      %c0_21 = arith.constant 0 : index
      %26 = vector.load %arg7[%c0_20, %c0_21] : memref<24x1xf32, #tpu.memory_space<vmem>>, vector<24x1xf32>
      %c0_22 = arith.constant 0 : index
      %c0_23 = arith.constant 0 : index
      %27 = vector.load %arg10[%c0_22, %c0_23] : memref<24x32xf32, #tpu.memory_space<vmem>>, vector<24x32xf32>
      %28 = vector.broadcast %26 : vector<24x1xf32> to vector<24x32xf32>
      %29 = arith.mulf %28, %27 : vector<24x32xf32>
      %30 = arith.truncf %29 : vector<24x32xf32> to vector<24x32xbf16>
      %c0_24 = arith.constant 0 : index
      %c0_25 = arith.constant 0 : index
      %31 = vector.load %arg9[%c0_24, %c0_25] : memref<24x32xbf16, #tpu.memory_space<vmem>>, vector<24x32xbf16>
      tpu.vector_store %arg9[%c0_24, %c0_25], %30 {strides = array<i32>} : memref<24x32xbf16, #tpu.memory_space<vmem>>, vector<24x32xbf16>,
    } else {
    }
    return
  }
  func.func @transform_0(%arg0: i32) -> (i32, i32) {
    %c0_i32 = arith.constant 0 : i32
    %c0_i32_0 = arith.constant 0 : i32
    return %arg0, %c0_i32 : i32, i32
  }
  func.func @transform_1(%arg0: i32) -> (i32, i32) {
    %c0_i32 = arith.constant 0 : i32
    %c0_i32_0 = arith.constant 0 : i32
    %c0_i32_1 = arith.constant 0 : i32
    return %c0_i32, %c0_i32_0 : i32, i32
  }
  func.func @transform_2(%arg0: i32) -> (i32, i32) {
    %c0_i32 = arith.constant 0 : i32
    %c0_i32_0 = arith.constant 0 : i32
    %c0_i32_1 = arith.constant 0 : i32
    return %c0_i32, %c0_i32_0 : i32, i32
  }
  func.func @transform_3(%arg0: i32) -> (i32, i32) {
    %c0_i32 = arith.constant 0 : i32
    %c0_i32_0 = arith.constant 0 : i32
    return %arg0, %c0_i32 : i32, i32
  }
  func.func @transform_4(%arg0: i32) -> (i32, i32) {
    %c0_i32 = arith.constant 0 : i32
    %c0_i32_0 = arith.constant 0 : i32
    return %arg0, %c0_i32 : i32, i32
  }
  func.func @transform_5(%arg0: i32) -> (i32, i32) {
    %c0_i32 = arith.constant 0 : i32
    %c0_i32_0 = arith.constant 0 : i32
    return %c0_i32, %arg0 : i32, i32
  }
  func.func @transform_6(%arg0: i32) -> (i32, i32) {
    %c0_i32 = arith.constant 0 : i32
    %c0_i32_0 = arith.constant 0 : i32
    %c0_i32_1 = arith.constant 0 : i32
    return %c0_i32, %c0_i32_0 : i32, i32
  }
  func.func @transform_7(%arg0: i32) -> (i32, i32) {
    %c0_i32 = arith.constant 0 : i32
    %c0_i32_0 = arith.constant 0 : i32
    return %arg0, %c0_i32 : i32, i32
  }
  func.func @transform_8(%arg0: i32) -> (i32, i32) {
    %c0_i32 = arith.constant 0 : i32
    %c0_i32_0 = arith.constant 0 : i32
    %c0_i32_1 = arith.constant 0 : i32
    return %c0_i32, %c0_i32_0 : i32, i32
  }
}

module attributes {stable_mosaic.version = 11 : i64} {
  func.func @_smooth_kernel(%arg0: i32, %arg1: i32, %arg2: memref<256x256xi8, #tpu.memory_space<vmem>>, %arg3: memref<256x32xbf16, #tpu.memory_space<vmem>>, %arg4: memref<256x1xf32, #tpu.memory_space<vmem>>, %arg5: memref<256x24xbf16, #tpu.memory_space<vmem>>, %arg6: memref<24x32xbf16, #tpu.memory_space<vmem>>, %arg7: memref<256x1xf32, #tpu.memory_space<vmem>>, %arg8: memref<256x32xf32, #tpu.memory_space<vmem>>) attributes {dimension_semantics = [#tpu.dimension_semantics<parallel>, #tpu.dimension_semantics<arbitrary>], iteration_bounds = array<i64: 2, 2>, scalar_prefetch = 0 : i64, scratch_operands = 0 : i64, tpu.core_type = #tpu.core_type<tc>, window_params = [{transform_indices = @transform_0, window_bounds = array<i64: 256, 256>}, {transform_indices = @transform_1, window_bounds = array<i64: 256, 32>}, {transform_indices = @transform_2, window_bounds = array<i64: 256, 1>}, {transform_indices = @transform_3, window_bounds = array<i64: 256, 24>}, {pipeline_mode = #tpu.pipeline_mode<synchronous>, transform_indices = @transform_4, window_bounds = array<i64: 24, 32>}, {transform_indices = @transform_5, window_bounds = array<i64: 256, 1>}, {transform_indices = @transform_6, window_bounds = array<i64: 256, 32>}]} {
    %c0_i32 = arith.constant 0 : i32
    %0 = arith.cmpi eq, %arg1, %c0_i32 : i32
    %1 = arith.extui %0 : i1 to i32
    %c0_i32_0 = arith.constant 0 : i32
    %2 = arith.cmpi ne, %1, %c0_i32_0 : i32
    scf.if %2 {
      %cst_9 = arith.constant 0.000000e+00 : f32
      %13 = vector.broadcast %cst_9 : f32 to vector<256x32xf32>
      %c0_10 = arith.constant 0 : index
      %c0_11 = arith.constant 0 : index
      %14 = vector.load %arg8[%c0_10, %c0_11] : memref<256x32xf32, #tpu.memory_space<vmem>>, vector<256x32xf32>
      tpu.vector_store %arg8[%c0_10, %c0_11], %13 {strides = array<i32>} : memref<256x32xf32, #tpu.memory_space<vmem>>, vector<256x32xf32>,
    } else {
    }
    %c0 = arith.constant 0 : index
    %c0_1 = arith.constant 0 : index
    %3 = vector.load %arg8[%c0, %c0_1] : memref<256x32xf32, #tpu.memory_space<vmem>>, vector<256x32xf32>
    %c0_2 = arith.constant 0 : index
    %c0_3 = arith.constant 0 : index
    %4 = vector.load %arg2[%c0_2, %c0_3] : memref<256x256xi8, #tpu.memory_space<vmem>>, vector<256x256xi8>
    %5 = arith.sitofp %4 : vector<256x256xi8> to vector<256x256xbf16>
    %c0_4 = arith.constant 0 : index
    %c0_5 = arith.constant 0 : index
    %6 = vector.load %arg3[%c0_4, %c0_5] : memref<256x32xbf16, #tpu.memory_space<vmem>>, vector<256x32xbf16>
    %cst = arith.constant dense<0.000000e+00> : vector<256x32xf32>
    %7 = tpu.matmul %5, %6, %cst {dimension_numbers = #tpu.dot_dimension_numbers<[1], [0], [0], [1], [0, 0, 1, 1], [], []>} : vector<256x256xbf16>, vector<256x32xbf16>, vector<256x32xf32> -> vector<256x32xf32>
    %8 = arith.addf %3, %7 : vector<256x32xf32>
    %c0_6 = arith.constant 0 : index
    %c0_7 = arith.constant 0 : index
    %9 = vector.load %arg8[%c0_6, %c0_7] : memref<256x32xf32, #tpu.memory_space<vmem>>, vector<256x32xf32>
    tpu.vector_store %arg8[%c0_6, %c0_7], %8 {strides = array<i32>} : memref<256x32xf32, #tpu.memory_space<vmem>>, vector<256x32xf32>,
    %c1_i32 = arith.constant 1 : i32
    %10 = arith.cmpi eq, %arg1, %c1_i32 : i32
    %11 = arith.extui %10 : i1 to i32
    %c0_i32_8 = arith.constant 0 : i32
    %12 = arith.cmpi ne, %11, %c0_i32_8 : i32
    scf.if %12 {
      %c0_9 = arith.constant 0 : index
      %c0_10 = arith.constant 0 : index
      %13 = vector.load %arg4[%c0_9, %c0_10] : memref<256x1xf32, #tpu.memory_space<vmem>>, vector<256x1xf32>
      %c0_11 = arith.constant 0 : index
      %c0_12 = arith.constant 0 : index
      %14 = vector.load %arg8[%c0_11, %c0_12] : memref<256x32xf32, #tpu.memory_space<vmem>>, vector<256x32xf32>
      %15 = vector.broadcast %13 : vector<256x1xf32> to vector<256x32xf32>
      %16 = arith.mulf %15, %14 : vector<256x32xf32>
      %c0_13 = arith.constant 0 : index
      %c0_14 = arith.constant 0 : index
      %17 = vector.load %arg7[%c0_13, %c0_14] : memref<256x1xf32, #tpu.memory_space<vmem>>, vector<256x1xf32>
      %c0_15 = arith.constant 0 : index
      %c0_16 = arith.constant 0 : index
      %18 = vector.load %arg5[%c0_15, %c0_16] : memref<256x24xbf16, #tpu.memory_space<vmem>>, vector<256x24xbf16>
      %c0_17 = arith.constant 0 : index
      %c0_18 = arith.constant 0 : index
      %19 = vector.load %arg6[%c0_17, %c0_18] : memref<24x32xbf16, #tpu.memory_space<vmem>>, vector<24x32xbf16>
      %cst_19 = arith.constant dense<0.000000e+00> : vector<256x32xf32>
      %20 = tpu.matmul %18, %19, %cst_19 {dimension_numbers = #tpu.dot_dimension_numbers<[1], [0], [0], [1], [0, 0, 1, 1], [], []>} : vector<256x24xbf16>, vector<24x32xbf16>, vector<256x32xf32> -> vector<256x32xf32>
      %21 = vector.broadcast %17 : vector<256x1xf32> to vector<256x32xf32>
      %22 = arith.mulf %21, %20 : vector<256x32xf32>
      %23 = arith.addf %16, %22 : vector<256x32xf32>
      %cst_20 = arith.constant 5.000000e-01 : f32
      %24 = vector.broadcast %cst_20 : f32 to vector<256x32xf32>
      %25 = arith.mulf %24, %23 : vector<256x32xf32>
      %cst_21 = arith.constant 0.000000e+00 : f32
      %26 = vector.broadcast %cst_21 : f32 to vector<256x32xf32>
      %27 = arith.maximumf %25, %26 : vector<256x32xf32>
      %c0_22 = arith.constant 0 : index
      %c0_23 = arith.constant 0 : index
      %28 = vector.load %arg8[%c0_22, %c0_23] : memref<256x32xf32, #tpu.memory_space<vmem>>, vector<256x32xf32>
      tpu.vector_store %arg8[%c0_22, %c0_23], %27 {strides = array<i32>} : memref<256x32xf32, #tpu.memory_space<vmem>>, vector<256x32xf32>,
    } else {
    }
    return
  }
  func.func @transform_0(%arg0: i32, %arg1: i32) -> (i32, i32) {
    %c0_i32 = arith.constant 0 : i32
    return %arg0, %arg1 : i32, i32
  }
  func.func @transform_1(%arg0: i32, %arg1: i32) -> (i32, i32) {
    %c0_i32 = arith.constant 0 : i32
    %c0_i32_0 = arith.constant 0 : i32
    return %arg1, %c0_i32 : i32, i32
  }
  func.func @transform_2(%arg0: i32, %arg1: i32) -> (i32, i32) {
    %c0_i32 = arith.constant 0 : i32
    %c0_i32_0 = arith.constant 0 : i32
    return %arg0, %c0_i32 : i32, i32
  }
  func.func @transform_3(%arg0: i32, %arg1: i32) -> (i32, i32) {
    %c0_i32 = arith.constant 0 : i32
    %c0_i32_0 = arith.constant 0 : i32
    return %arg0, %c0_i32 : i32, i32
  }
  func.func @transform_4(%arg0: i32, %arg1: i32) -> (i32, i32) {
    %c0_i32 = arith.constant 0 : i32
    %c0_i32_0 = arith.constant 0 : i32
    %c0_i32_1 = arith.constant 0 : i32
    return %c0_i32, %c0_i32_0 : i32, i32
  }
  func.func @transform_5(%arg0: i32, %arg1: i32) -> (i32, i32) {
    %c0_i32 = arith.constant 0 : i32
    %c0_i32_0 = arith.constant 0 : i32
    return %arg0, %c0_i32 : i32, i32
  }
  func.func @transform_6(%arg0: i32, %arg1: i32) -> (i32, i32) {
    %c0_i32 = arith.constant 0 : i32
    %c0_i32_0 = arith.constant 0 : i32
    return %arg0, %c0_i32 : i32, i32
  }
}

</mosaic_0001>

<bundles_post_ra>
// kernel: gcn_hgnnconv_forward.2
= control target key start
LH: loop header
LB: loop body
LE: loop exit
PB: predicated region body
PF: predicated region fallthrough
CT: control target
= control target key end

     0   :  { %s1949_s27 = smov 0   ;;  %s1951_s28 = smov 0   ;;  %s2392_s0 = inlined_call_operand.vmem [shape: bf16[512,16], index: 0, kind: input, shape index: {}]   ;;  %s2393_s1 = inlined_call_operand.vmem [shape: bf16[16,32], index: 1, kind: input, shape index: {}]   ;;  %s2394_s2 = inlined_call_operand.vmem [shape: f32[1,32], index: 2, kind: input, shape index: {}]   ;;  %s2395_s3 = inlined_call_operand.vmem [shape: f32[512,1], index: 3, kind: input, shape index: {}]   ;;  %s2396_s4 = inlined_call_operand.vmem [shape: f32[512,1], index: 4, kind: input, shape index: {}]   ;;  %s2397_s5 = inlined_call_operand.vmem [shape: bf16[24,512], index: 5, kind: input, shape index: {}]   ;;  %s2398_s6 = inlined_call_operand.vmem [shape: f32[24,1], index: 6, kind: input, shape index: {}]   ;;  %s2399_s7 = inlined_call_operand.vmem [shape: bf16[512,32], index: 7, kind: output, shape index: {0}]   ;;  %s2400_s8 = inlined_call_operand.vmem [shape: bf16[24,32], index: 8, kind: output, shape index: {1}]  }
   0x1   :  { %s1953_s29 = smov 0  }
   0x2 LB: > { %s1962_s30 = sadd.s32 4294967295, %s1899_s29   ;;  %s1964_s9 = sadd.s32 1, %s1899_s29   ;;  %s1899_s29 = sphi %s1953_s29, %s2403_s29   ;;  %s1895_s28 = sphi %s1951_s28, %s2402_s28   ;;  %s1891_s27 = sphi %s1949_s27, %s2401_s27  }
   0x3   : > { %s143_s10 = ssub.s32 %s1899_s29, %s1964_s9  ;;  %s146_s11 = sadd.s32 1, %s1895_s28 }
   0x4   : > { %p144_p0 = scmp.eq.s32.totalorder %s143_s10, 0  ;;  %p153_p1 = scmp.ne.s32.totalorder %s1895_s28, %s1891_s27 }
   0x5   : > { %p154_p2 = scmp.eq.s32.totalorder %s1899_s29, 0  ;;  %p1616_p4 = scmp.ge.s32.totalorder %s1899_s29, 2 }
   0x6   : > { %s1971_s12 = scalar_select %p144_p0, %s1895_s28, %s146_s11  }
   0x7   : > { %p155_p3 = por %p154_p2, %p153_p1  ;;  %256 = sbr.rel (%p1616_p4) target bundleno = 18 (0x12), region = 28 }
   0xc   : > { %286 = sbr.rel (!%p155_p3) target bundleno = 18 (0x12), region = 44  ;;  %s288_s13 = sand.u32 (%p155_p3), 1, %s1895_s28  }
   0xd   : > { %s1705_s14 = sshll.u32 (%p155_p3), %s1899_s29, 3  ;;  %s1820_s15 = smul.u32 (%p155_p3), 24, %s288_s13 }
   0xe   : > { %s293_s18 = scalar_lea.vmem (%p155_p3), %s2397_s5, %s1705_s14 }
   0xf   : > { %v326_v0 = vld [vmem:[%s293_s18] sm:$0xff] (%p155_p3)  ;;  %v328_v1 = vld [vmem:[%s293_s18 + $0x10] sm:$0xff] (%p155_p3)  ;;  %s290_s19 = scalar_lea.vmem (%p155_p3), [#allocation3], %s1820_s15 }
  0x10   : > { %v330_v2 = vld [vmem:[%s293_s18 + $0x20] sm:$0xff] (%p155_p3)  ;;  %327 = vst [vmem:[%s290_s19] sm:$0xff] (%p155_p3), %v326_v0  ;;  %329 = vst [vmem:[%s290_s19 + $0x8] sm:$0xff] (%p155_p3), %v328_v1 }
  0x11   : > { %331 = vst [vmem:[%s290_s19 + $0x10] sm:$0xff] %v330_v2 }
  0x12 PF: > { %p1619_p5 = scmp.ge.s32.totalorder %s1899_s29, 1  ;;  %p336_p6 = scmp.lt.s32.totalorder %s1899_s29, 3 }
  0x14   : > { %p337_p7 = pnand %p1619_p5, %p336_p6 }
  0x15   : > { %s343_s20 = sand.u32 (!%p337_p7), 1, %s1891_s27   ;;  %s1620_s24 = sshll.u32 (!%p337_p7), %s1962_s30, 5 }
  0x16   : > { %340 = sbr.rel (%p337_p7) target bundleno = 833 (0x341), region = 82  ;;  %p392_p8 = scmp.lt.s32.totalorder (!%p337_p7), %s1620_s24, 63 }
  0x17   : > { %s1981_s23 = smul.u32 (!%p337_p7), 24, %s343_s20  ;;  %p1694_p9 = scmp.ne.s32.totalorder (!%p337_p7), %s1962_s30, 0 }
  0x1b   : > { %v1851_v3 = vld [vmem:[%s2393_s1] sm:$0xff]   ;;  %v1901_v4 = vmov 0   ;;  %s2405_s24 = smov (!%p392_p8, %s1620_s24), 63  ;;  %vm544_vm0 = vcmask 130048   ;;  %vm1106_vm1 = vcmask 257024  }
  0x1c   : > { %1786 = vmatprep.subr.bf16.mxu0 %v1851_v3  ;;  %1850 = vset.pattern.permute.xlu1 %v1901_v4  ;;  %s1621_s25 = sshll.u32 %s2405_s24, 2  ;;  %s1623_s26 = sshll.u32 %s2405_s24, 3  ;;  %v2076_v0 = vld [vmem:[%s2394_s2] ss:$0 sm:$0xff] }
  0x1d   : > { %1787 = vmatpush3.bf16.msra.mxu0 %v1851_v3  ;;  %1849 = vset.pattern.permute.xlu0 %v1901_v4  ;;  %s1995_s10 = scalar_lea.vmem %s2392_s0, %s1621_s25  ;;  %s2001_s14 = scalar_lea.vmem %s2396_s4, %s1623_s26 }
  0x1e   : > { %v1852_v5 = vld [vmem:[%s1995_s10] sm:$0xff]   ;;  %v1853_v6 = vld [vmem:[%s1995_s10 + $0x8] sm:$0xff]   ;;  %s2007_s17 = scalar_lea.vmem %s2395_s3, %s1623_s26  ;;  %v1854_v7 = vld [vmem:[%s1995_s10 + $0x10] sm:$0xff]   ;;  %s2090_s22 = scalar_lea.vmem %s2399_s7, %s1621_s25 }
  0x1f   : > { %1788 = vmatprep.mubr.msk.bf16.mxu0 %vm544_vm0, %v1852_v5  ;;  %v756_v8 = vld [vmem:[%s2007_s17 + $0x10] sm:$0xff]  ;;  %v754_v9 = vld [vmem:[%s2007_s17] sm:$0xff]  ;;  %v757_v10 = vld [vmem:[%s2007_s17 + $0x18] sm:$0xff]  ;;  %s2285_s24 = scalar_lea.vmem [#allocation3], %s1981_s23 }
  0x20   : > { %1789 = vmatmul.mubr.msk.bf16.vlgmr.msra.gmra.mxu0 %vm544_vm0, %v1853_v6  ;;  %798 = vperm.xlu1 %1850, %v756_v8   ;;  %v1855_v11 = vld [vmem:[%s1995_s10 + $0x18] sm:$0xff]   ;;  %v755_v12 = vld [vmem:[%s2007_s17 + $0x8] sm:$0xff]  ;;  %v1856_v13 = vld [vmem:[%s1995_s10 + $0x20] sm:$0xff]  }
  0x21   : > { %1792 = vmatprep.mubr.msk.bf16.mxu0 %vm544_vm0, %v1854_v7  ;;  %788 = vperm.xlu0 %1849, %v754_v9   ;;  %v759_v14 = vld [vmem:[%s2007_s17 + $0x28] sm:$0xff]  ;;  %v758_v15 = vld [vmem:[%s2007_s17 + $0x20] sm:$0xff]  ;;  %v761_v16 = vld [vmem:[%s2007_s17 + $0x38] sm:$0xff] }
  0x22   : > { %v760_v17 = vld [vmem:[%s2007_s17 + $0x30] sm:$0xff]  ;;  %v1857_v18 = vld [vmem:[%s1995_s10 + $0x28] sm:$0xff]   ;;  %v762_v21 = vld [vmem:[%s2007_s17 + $0x40] sm:$0xff] }
  0x23   : > { %v1858_v19 = vld [vmem:[%s1995_s10 + $0x30] sm:$0xff]   ;;  %v763_v20 = vld [vmem:[%s2007_s17 + $0x48] sm:$0xff]  ;;  %v765_v22 = vld [vmem:[%s2007_s17 + $0x58] sm:$0xff] }
  0x24   : > { %803 = vperm.xlu1 %1850, %v757_v10   ;;  %v764_v23 = vld [vmem:[%s2007_s17 + $0x50] sm:$0xff]  ;;  %v1859_v24 = vld [vmem:[%s1995_s10 + $0x38] sm:$0xff]   ;;  %v1860_v25 = vld [vmem:[%s1995_s10 + $0x40] sm:$0xff]  }
  0x25   : > { %793 = vperm.xlu0 %1849, %v755_v12   ;;  %v767_v26 = vld [vmem:[%s2007_s17 + $0x68] sm:$0xff]  ;;  %v766_v27 = vld [vmem:[%s2007_s17 + $0x60] sm:$0xff]  ;;  %v769_v28 = vld [vmem:[%s2007_s17 + $0x78] sm:$0xff] }
  0x26   : > { %v768_v29 = vld [vmem:[%s2007_s17 + $0x70] sm:$0xff]  ;;  %v1861_v30 = vld [vmem:[%s1995_s10 + $0x48] sm:$0xff]   ;;  %v770_v33 = vld [vmem:[%s2007_s17 + $0x80] sm:$0xff] }
  0x27   : > { %v1862_v31 = vld [vmem:[%s1995_s10 + $0x50] sm:$0xff]   ;;  %v771_v32 = vld [vmem:[%s2007_s17 + $0x88] sm:$0xff]  ;;  %v773_v34 = vld [vmem:[%s2007_s17 + $0x98] sm:$0xff] }
  0x28   : > { %1793 = vmatmul.mubr.msk.bf16.gmra.mxu0 %vm544_vm0, %v1855_v11  ;;  %813 = vperm.xlu1 %1850, %v759_v14   ;;  %v772_v35 = vld [vmem:[%s2007_s17 + $0x90] sm:$0xff]  ;;  %v1863_v36 = vld [vmem:[%s1995_s10 + $0x58] sm:$0xff]   ;;  %v1864_v37 = vld [vmem:[%s1995_s10 + $0x60] sm:$0xff]  }
  0x29   : > { %1796 = vmatprep.mubr.msk.bf16.mxu0 %vm544_vm0, %v1856_v13  ;;  %808 = vperm.xlu0 %1849, %v758_v15   ;;  %v775_v38 = vld [vmem:[%s2007_s17 + $0xa8] sm:$0xff]  ;;  %v774_v39 = vld [vmem:[%s2007_s17 + $0xa0] sm:$0xff]  ;;  %v777_v40 = vld [vmem:[%s2007_s17 + $0xb8] sm:$0xff] }
  0x2a   : > { %v776_v41 = vld [vmem:[%s2007_s17 + $0xb0] sm:$0xff]  ;;  %v1865_v42 = vld [vmem:[%s1995_s10 + $0x68] sm:$0xff]   ;;  %v778_v45 = vld [vmem:[%s2007_s17 + $0xc0] sm:$0xff] }
  0x2b   : > { %v1866_v43 = vld [vmem:[%s1995_s10 + $0x70] sm:$0xff]   ;;  %v779_v44 = vld [vmem:[%s2007_s17 + $0xc8] sm:$0xff]  ;;  %v781_v46 = vld [vmem:[%s2007_s17 + $0xd8] sm:$0xff] }
  0x2c   : > { %823 = vperm.xlu1 %1850, %v761_v16   ;;  %v780_v47 = vld [vmem:[%s2007_s17 + $0xd0] sm:$0xff]  ;;  %v1867_v48 = vld [vmem:[%s1995_s10 + $0x78] sm:$0xff]   ;;  %v783_v49 = vld [vmem:[%s2007_s17 + $0xe8] sm:$0xff] }
  0x2d   : > { %818 = vperm.xlu0 %1849, %v760_v17   ;;  %v782_v50 = vld [vmem:[%s2007_s17 + $0xe0] sm:$0xff]  ;;  %v785_v51 = vld [vmem:[%s2007_s17 + $0xf8] sm:$0xff]  ;;  %v784_v52 = vld [vmem:[%s2007_s17 + $0xf0] sm:$0xff] }
  0x30   : > { %1797 = vmatmul.mubr.msk.bf16.gmra.mxu0 %vm544_vm0, %v1857_v18  ;;  %833 = vperm.xlu1 %1850, %v763_v20  }
  0x31   : > { %1800 = vmatprep.mubr.msk.bf16.mxu0 %vm544_vm0, %v1858_v19  ;;  %828 = vperm.xlu0 %1849, %v762_v21  }
  0x34   : > { %843 = vperm.xlu1 %1850, %v765_v22  }
  0x35   : > { %838 = vperm.xlu0 %1849, %v764_v23  }
  0x38   : > { %1801 = vmatmul.mubr.msk.bf16.gmra.mxu0 %vm544_vm0, %v1859_v24  ;;  %853 = vperm.xlu1 %1850, %v767_v26  }
  0x39   : > { %1804 = vmatprep.mubr.msk.bf16.mxu0 %vm544_vm0, %v1860_v25  ;;  %848 = vperm.xlu0 %1849, %v766_v27  }
  0x3c   : > { %863 = vperm.xlu1 %1850, %v769_v28  }
  0x3d   : > { %858 = vperm.xlu0 %1849, %v768_v29  }
  0x40   : > { %1805 = vmatmul.mubr.msk.bf16.gmra.mxu0 %vm544_vm0, %v1861_v30  ;;  %873 = vperm.xlu1 %1850, %v771_v32  }
  0x41   : > { %1808 = vmatprep.mubr.msk.bf16.mxu0 %vm544_vm0, %v1862_v31  ;;  %868 = vperm.xlu0 %1849, %v770_v33  }
  0x44   : > { %883 = vperm.xlu1 %1850, %v773_v34  }
  0x45   : > { %878 = vperm.xlu0 %1849, %v772_v35  }
  0x48   : > { %1809 = vmatmul.mubr.msk.bf16.gmra.mxu0 %vm544_vm0, %v1863_v36  ;;  %893 = vperm.xlu1 %1850, %v775_v38  }
  0x49   : > { %1812 = vmatprep.mubr.msk.bf16.mxu0 %vm544_vm0, %v1864_v37  ;;  %888 = vperm.xlu0 %1849, %v774_v39  }
  0x4c   : > { %903 = vperm.xlu1 %1850, %v777_v40  }
  0x4d   : > { %898 = vperm.xlu0 %1849, %v776_v41  }
  0x50   : > { %1813 = vmatmul.mubr.msk.bf16.gmra.mxu0 %vm544_vm0, %v1865_v42  ;;  %913 = vperm.xlu1 %1850, %v779_v44  }
  0x51   : > { %1816 = vmatprep.mubr.msk.bf16.mxu0 %vm544_vm0, %v1866_v43  ;;  %908 = vperm.xlu0 %1849, %v778_v45  }
  0x54   : > { %923 = vperm.xlu1 %1850, %v781_v46  }
  0x55   : > { %918 = vperm.xlu0 %1849, %v780_v47  }
  0x58   : > { %1817 = vmatmul.mubr.msk.bf16.gmra.mxu0 %vm544_vm0, %v1867_v48  ;;  %933 = vperm.xlu1 %1850, %v783_v49  }
  0x59   : > { %928 = vperm.xlu0 %1849, %v782_v50  }
  0x5c   : > { %943 = vperm.xlu1 %1850, %v785_v51  }
  0x5d   : > { %938 = vperm.xlu0 %1849, %v784_v52  }
  0x9b   : > { %v799_v54 = vpop.permute.xlu1 %798 }
  0x9c   : > { %v789_v53 = vpop.permute.xlu0 %788 }
  0x9f   : > { %v804_v56 = vpop.permute.xlu1 %803 }
  0xa0   : > { %v794_v55 = vpop.permute.xlu0 %793 }
  0xa3   : > { %v814_v58 = vpop.permute.xlu1 %813 }
  0xa4   : > { %v809_v57 = vpop.permute.xlu0 %808 }
  0xa7   : > { %v824_v60 = vpop.permute.xlu1 %823 }
  0xa8   : > { %v819_v59 = vpop.permute.xlu0 %818 }
  0xab   : > { %v2071_v62 = vpop.permute.xlu1 %833 }
  0xac   : > { %v829_v61 = vpop.permute.xlu0 %828 }
  0xaf   : > { %v844_v3 = vpop.permute.xlu1 %843 }
  0xb0   : > { %v839_v63 = vpop.permute.xlu0 %838 }
  0xb3   : > { %v2104_v17 = vpop.permute.xlu1 %853 }
  0xb4   : > { %v2092_v8 = vpop.permute.xlu0 %848 }
  0xb7   : > { %v864_v31 = vpop.permute.xlu1 %863 }
  0xb8   : > { %v859_v22 = vpop.permute.xlu0 %858 }
  0xbb   : > { %v874_v45 = vpop.permute.xlu1 %873 }
  0xbc   : > { %v869_v36 = vpop.permute.xlu0 %868 }
  0xc0   : > { %v879_v50 = vpop.permute.xlu0 %878 }
  0xe0   : > { %v1790_v1 = vpop.f32.mrf.mxu0 }
  0xe1   : > { %v2079_v2 = vadd.f32 %v1790_v1, %v2076_v0 }
  0xe2   : > { %v627_v5 = vpop.f32.mrf.mxu0 }
  0xe3   : > { %v948_v6 = vmul.f32 %v799_v54, %v2079_v2  ;;  %v2083_v7 = vadd.f32 %v2076_v0, %v627_v5 }
  0xe4   : > { %v1791_v9 = vpop.f32.mrf.mxu0 }
  0xe5   : > { %v1708_v10 = vpack.c.bf16 %v948_v6, %v948_v6  ;;  %v946_v11 = vmul.f32 %v789_v53, %v2083_v7  ;;  %v2096_v12 = vadd.f32 %v1791_v9, %v2076_v0 }
  0xe6   : > { %v630_v13 = vpop.f32.mrf.mxu0 }
  0xe7   : > { %1109 = vst.msk [vmem:[%s2090_s22 + $0x8] sm:$0xf] %vm1106_vm1, %v1708_v10  ;;  %v1706_v14 = vpack.c.bf16 %v946_v11, %v946_v11  ;;  %v949_v15 = vmul.f32 %v804_v56, %v2096_v12  ;;  %v2102_v16 = vadd.f32 %v2076_v0, %v630_v13 }
  0xe8   : > { %v1794_v18 = vpop.f32.mrf.mxu0 }
  0xe9   : > { %1107 = vst.msk [vmem:[%s2090_s22] sm:$0xf] %vm1106_vm1, %v1706_v14  ;;  %v1709_v19 = vpack.c.bf16 %v949_v15, %v949_v15  ;;  %v947_v20 = vmul.f32 %v794_v55, %v2102_v16  ;;  %v2110_v21 = vadd.f32 %v1794_v18, %v2076_v0 }
  0xea   : > { %v643_v23 = vpop.f32.mrf.mxu0 }
  0xeb   : > { %1110 = vst.msk [vmem:[%s2090_s22 + $0xc] sm:$0xf] %vm1106_vm1, %v1709_v19  ;;  %v1707_v24 = vpack.c.bf16 %v947_v20, %v947_v20  ;;  %v952_v25 = vmul.f32 %v819_v59, %v2110_v21  ;;  %v2116_v26 = vadd.f32 %v2076_v0, %v643_v23  ;;  %v884_v59 = vpop.permute.xlu1 %883 }
  0xec   : > { %v1795_v27 = vpop.f32.mrf.mxu0 }
  0xed   : > { %1108 = vst.msk [vmem:[%s2090_s22 + $0x4] sm:$0xf] %vm1106_vm1, %v1707_v24  ;;  %v1712_v28 = vpack.c.bf16 %v952_v25, %v952_v25  ;;  %v950_v29 = vmul.f32 %v809_v57, %v2116_v26  ;;  %v2122_v30 = vadd.f32 %v1795_v27, %v2076_v0 }
  0xee   : > { %v646_v32 = vpop.f32.mrf.mxu0 }
  0xef   : > { %1113 = vst.msk [vmem:[%s2090_s22 + $0x18] sm:$0xf] %vm1106_vm1, %v1712_v28  ;;  %v1710_v33 = vpack.c.bf16 %v950_v29, %v950_v29  ;;  %v953_v34 = vmul.f32 %v824_v60, %v2122_v30  ;;  %v2128_v35 = vadd.f32 %v2076_v0, %v646_v32  ;;  %v894_v15 = vpop.permute.xlu1 %893 }
  0xf0   : > { %v1798_v37 = vpop.f32.mrf.mxu0 }
  0xf1   : > { %1111 = vst.msk [vmem:[%s2090_s22 + $0x10] sm:$0xf] %vm1106_vm1, %v1710_v33  ;;  %v1713_v38 = vpack.c.bf16 %v953_v34, %v953_v34  ;;  %v951_v39 = vmul.f32 %v814_v58, %v2128_v35  ;;  %v2134_v40 = vadd.f32 %v1798_v37, %v2076_v0 }
  0xf2   : > { %v659_v41 = vpop.f32.mrf.mxu0 }
  0xf3   : > { %1114 = vst.msk [vmem:[%s2090_s22 + $0x1c] sm:$0xf] %vm1106_vm1, %v1713_v38  ;;  %v1711_v42 = vpack.c.bf16 %v951_v39, %v951_v39  ;;  %v956_v43 = vmul.f32 %v839_v63, %v2134_v40  ;;  %v2140_v44 = vadd.f32 %v2076_v0, %v659_v41  ;;  %v904_v32 = vpop.permute.xlu1 %903 }
  0xf4   : > { %v1799_v46 = vpop.f32.mrf.mxu0 }
  0xf5   : > { %1112 = vst.msk [vmem:[%s2090_s22 + $0x14] sm:$0xf] %vm1106_vm1, %v1711_v42  ;;  %v1716_v47 = vpack.c.bf16 %v956_v43, %v956_v43  ;;  %v954_v48 = vmul.f32 %v829_v61, %v2140_v44  ;;  %v2146_v49 = vadd.f32 %v1799_v46, %v2076_v0 }
  0xf6   : > { %v662_v51 = vpop.f32.mrf.mxu0 }
  0xf7   : > { %1117 = vst.msk [vmem:[%s2090_s22 + $0x28] sm:$0xf] %vm1106_vm1, %v1716_v47  ;;  %v1714_v52 = vpack.c.bf16 %v954_v48, %v954_v48  ;;  %v957_v53 = vmul.f32 %v844_v3, %v2146_v49  ;;  %v2152_v54 = vadd.f32 %v2076_v0, %v662_v51  ;;  %v889_v3 = vpop.permute.xlu0 %888  ;;  %v914_v51 = vpop.permute.xlu1 %913 }
  0xf8   : > { %v1802_v55 = vpop.f32.mrf.mxu0 }
  0xf9   : > { %1115 = vst.msk [vmem:[%s2090_s22 + $0x20] sm:$0xf] %vm1106_vm1, %v1714_v52  ;;  %v1717_v56 = vpack.c.bf16 %v957_v53, %v957_v53  ;;  %v955_v57 = vmul.f32 %v2071_v62, %v2152_v54  ;;  %v2159_v58 = vadd.f32 %v1802_v55, %v2076_v0 }
  0xfa   : > { %v675_v60 = vpop.f32.mrf.mxu0 }
  0xfb   : > { %1118 = vst.msk [vmem:[%s2090_s22 + $0x2c] sm:$0xf] %vm1106_vm1, %v1717_v56  ;;  %v1715_v61 = vpack.c.bf16 %v955_v57, %v955_v57  ;;  %v960_v63 = vmul.f32 %v859_v22, %v2159_v58  ;;  %v2165_v1 = vadd.f32 %v2076_v0, %v675_v60  ;;  %v899_v22 = vpop.permute.xlu0 %898 }
  0xfc   : > { %v1803_v5 = vpop.f32.mrf.mxu0 }
  0xfd   : > { %1116 = vst.msk [vmem:[%s2090_s22 + $0x24] sm:$0xf] %vm1106_vm1, %v1715_v61  ;;  %v1720_v6 = vpack.c.bf16 %v960_v63, %v960_v63  ;;  %v958_v62 = vmul.f32 %v2092_v8, %v2165_v1  ;;  %v2172_v9 = vadd.f32 %v1803_v5, %v2076_v0 }
  0xfe   : > { %v678_v10 = vpop.f32.mrf.mxu0 }
  0xff   : > { %1121 = vst.msk [vmem:[%s2090_s22 + $0x38] sm:$0xf] %vm1106_vm1, %v1720_v6  ;;  %v1718_v11 = vpack.c.bf16 %v958_v62, %v958_v62  ;;  %v961_v13 = vmul.f32 %v864_v31, %v2172_v9  ;;  %v2178_v14 = vadd.f32 %v2076_v0, %v678_v10  ;;  %v909_v39 = vpop.permute.xlu0 %908  ;;  %v924_v62 = vpop.permute.xlu1 %923 }
 0x100   : > { %v1806_v18 = vpop.f32.mrf.mxu0 }
 0x101   : > { %1119 = vst.msk [vmem:[%s2090_s22 + $0x30] sm:$0xf] %vm1106_vm1, %v1718_v11  ;;  %v1721_v19 = vpack.c.bf16 %v961_v13, %v961_v13  ;;  %v959_v8 = vmul.f32 %v2104_v17, %v2178_v14  ;;  %v2185_v20 = vadd.f32 %v1806_v18, %v2076_v0 }
 0x102   : > { %v691_v23 = vpop.f32.mrf.mxu0 }
 0x103   : > { %1122 = vst.msk [vmem:[%s2090_s22 + $0x3c] sm:$0xf] %vm1106_vm1, %v1721_v19  ;;  %v1719_v24 = vpack.c.bf16 %v959_v8, %v959_v8  ;;  %v964_v25 = vmul.f32 %v879_v50, %v2185_v20  ;;  %v2191_v27 = vadd.f32 %v2076_v0, %v691_v23  ;;  %v919_v56 = vpop.permute.xlu0 %918 }
 0x104   : > { %v1807_v28 = vpop.f32.mrf.mxu0 }
 0x105   : > { %1120 = vst.msk [vmem:[%s2090_s22 + $0x34] sm:$0xf] %vm1106_vm1, %v1719_v24  ;;  %v1724_v29 = vpack.c.bf16 %v964_v25, %v964_v25  ;;  %v962_v17 = vmul.f32 %v869_v36, %v2191_v27  ;;  %v2197_v31 = vadd.f32 %v1807_v28, %v2076_v0 }
 0x106   : > { %v694_v33 = vpop.f32.mrf.mxu0 }
 0x107   : > { %1125 = vst.msk [vmem:[%s2090_s22 + $0x48] sm:$0xf] %vm1106_vm1, %v1724_v29  ;;  %v1722_v34 = vpack.c.bf16 %v962_v17, %v962_v17  ;;  %v965_v37 = vmul.f32 %v884_v59, %v2197_v31  ;;  %v2203_v38 = vadd.f32 %v2076_v0, %v694_v33  ;;  %v929_v19 = vpop.permute.xlu0 %928  ;;  %v934_v17 = vpop.permute.xlu1 %933 }
 0x108   : > { %v1810_v41 = vpop.f32.mrf.mxu0 }
 0x109   : > { %1123 = vst.msk [vmem:[%s2090_s22 + $0x40] sm:$0xf] %vm1106_vm1, %v1722_v34  ;;  %v1725_v42 = vpack.c.bf16 %v965_v37, %v965_v37  ;;  %v963_v36 = vmul.f32 %v874_v45, %v2203_v38  ;;  %v2209_v43 = vadd.f32 %v1810_v41, %v2076_v0 }
 0x10a   : > { %v707_v46 = vpop.f32.mrf.mxu0 }
 0x10b   : > { %1126 = vst.msk [vmem:[%s2090_s22 + $0x4c] sm:$0xf] %vm1106_vm1, %v1725_v42  ;;  %v1723_v47 = vpack.c.bf16 %v963_v36, %v963_v36  ;;  %v968_v48 = vmul.f32 %v899_v22, %v2209_v43  ;;  %v2215_v50 = vadd.f32 %v2076_v0, %v707_v46 }
 0x10c   : > { %v1811_v52 = vpop.f32.mrf.mxu0 }
 0x10d   : > { %1124 = vst.msk [vmem:[%s2090_s22 + $0x44] sm:$0xf] %vm1106_vm1, %v1723_v47  ;;  %v1728_v53 = vpack.c.bf16 %v968_v48, %v968_v48  ;;  %v966_v45 = vmul.f32 %v889_v3, %v2215_v50  ;;  %v2221_v55 = vadd.f32 %v1811_v52, %v2076_v0 }
 0x10e   : > { %v710_v57 = vpop.f32.mrf.mxu0 }
 0x10f   : > { %1129 = vst.msk [vmem:[%s2090_s22 + $0x58] sm:$0xf] %vm1106_vm1, %v1728_v53  ;;  %v1726_v59 = vpack.c.bf16 %v966_v45, %v966_v45  ;;  %v969_v60 = vmul.f32 %v904_v32, %v2221_v55  ;;  %v2227_v61 = vadd.f32 %v2076_v0, %v710_v57  ;;  %v944_v53 = vpop.permute.xlu1 %943 }
 0x110   : > { %v1814_v63 = vpop.f32.mrf.mxu0 }
 0x111   : > { %1127 = vst.msk [vmem:[%s2090_s22 + $0x50] sm:$0xf] %vm1106_vm1, %v1726_v59  ;;  %v1729_v5 = vpack.c.bf16 %v969_v60, %v969_v60  ;;  %v967_v3 = vmul.f32 %v894_v15, %v2227_v61  ;;  %v2233_v6 = vadd.f32 %v1814_v63, %v2076_v0 }
 0x112   : > { %v723_v10 = vpop.f32.mrf.mxu0 }
 0x113   : > { %1130 = vst.msk [vmem:[%s2090_s22 + $0x5c] sm:$0xf] %vm1106_vm1, %v1729_v5  ;;  %v1727_v11 = vpack.c.bf16 %v967_v3, %v967_v3  ;;  %v972_v13 = vmul.f32 %v919_v56, %v2233_v6  ;;  %v2239_v18 = vadd.f32 %v2076_v0, %v723_v10 }
 0x114   : > { %v1815_v8 = vpop.f32.mrf.mxu0 }
 0x115   : > { %1128 = vst.msk [vmem:[%s2090_s22 + $0x54] sm:$0xf] %vm1106_vm1, %v1727_v11  ;;  %v1732_v22 = vpack.c.bf16 %v972_v13, %v972_v13  ;;  %v970_v15 = vmul.f32 %v909_v39, %v2239_v18  ;;  %v2245_v23 = vadd.f32 %v1815_v8, %v2076_v0  ;;  %v939_v39 = vpop.permute.xlu0 %938 }
 0x116   : > { %v726_v24 = vpop.f32.mrf.mxu0 }
 0x117   : > { %1133 = vst.msk [vmem:[%s2090_s22 + $0x68] sm:$0xf] %vm1106_vm1, %v1732_v22  ;;  %v1730_v25 = vpack.c.bf16 %v970_v15, %v970_v15  ;;  %v973_v28 = vmul.f32 %v924_v62, %v2245_v23  ;;  %v2251_v29 = vadd.f32 %v2076_v0, %v726_v24 }
 0x118   : > { %v1818_v32 = vpop.f32.mrf.mxu0 }
 0x119   : > { %1131 = vst.msk [vmem:[%s2090_s22 + $0x60] sm:$0xf] %vm1106_vm1, %v1730_v25  ;;  %v1733_v33 = vpack.c.bf16 %v973_v28, %v973_v28  ;;  %v971_v34 = vmul.f32 %v914_v51, %v2251_v29  ;;  %v2257_v37 = vadd.f32 %v1818_v32, %v2076_v0 }
 0x11a   : > { %v739_v41 = vpop.f32.mrf.mxu0 }
 0x11b   : > { %1134 = vst.msk [vmem:[%s2090_s22 + $0x6c] sm:$0xf] %vm1106_vm1, %v1733_v33  ;;  %v1731_v42 = vpack.c.bf16 %v971_v34, %v971_v34  ;;  %v976_v36 = vmul.f32 %v939_v39, %v2257_v37  ;;  %v2263_v46 = vadd.f32 %v2076_v0, %v739_v41 }
 0x11c   : > { %v1819_v47 = vpop.f32.mrf.mxu0 }
 0x11d   : > { %1132 = vst.msk [vmem:[%s2090_s22 + $0x64] sm:$0xf] %vm1106_vm1, %v1731_v42  ;;  %v1736_v48 = vpack.c.bf16 %v976_v36, %v976_v36  ;;  %v974_v51 = vmul.f32 %v929_v19, %v2263_v46  ;;  %v2269_v52 = vadd.f32 %v1819_v47, %v2076_v0 }
 0x11e   : > { %v742_v45 = vpop.f32.mrf.mxu0 }
 0x11f   : > { %1137 = vst.msk [vmem:[%s2090_s22 + $0x78] sm:$0xf] %vm1106_vm1, %v1736_v48  ;;  %v1734_v56 = vpack.c.bf16 %v974_v51, %v974_v51  ;;  %v977_v57 = vmul.f32 %v944_v53, %v2269_v52  ;;  %v2275_v59 = vadd.f32 %v2076_v0, %v742_v45 }
 0x121   : > { %1135 = vst.msk [vmem:[%s2090_s22 + $0x70] sm:$0xf] %vm1106_vm1, %v1734_v56  ;;  %v1737_v60 = vpack.c.bf16 %v977_v57, %v977_v57  ;;  %v975_v63 = vmul.f32 %v934_v17, %v2275_v59  ;;  %1142 = sbr.rel (%p1694_p9) target bundleno = 297 (0x129), region = 90 }
 0x123   : > { %1138 = vst.msk [vmem:[%s2090_s22 + $0x7c] sm:$0xf] %vm1106_vm1, %v1737_v60  ;;  %v1735_v5 = vpack.c.bf16 %v975_v63, %v975_v63 }
 0x125   : > { %1136 = vst.msk [vmem:[%s2090_s22 + $0x74] sm:$0xf] %vm1106_vm1, %v1735_v5 }
 0x126   : > { %vm1143_vm2 = vcmask 261120   ;;  %v1902_v3 = vmov 0.0  }
 0x127   : > { %1144 = vst.msk [vmem:[#allocation2] sm:$0xff] %vm1143_vm2, %v1902_v3  ;;  %1145 = vst.msk [vmem:[#allocation2 + $0x8] sm:$0xff] %vm1143_vm2, %v1902_v3 }
 0x128   : > { %1146 = vst.msk [vmem:[#allocation2 + $0x10] sm:$0xff] %vm1143_vm2, %v1902_v3 }
 0x129 PF: > { %1869 = vset.pattern.permute.xlu1 %v1901_v4  ;;  %1868 = vset.pattern.permute.xlu0 %v1901_v4  ;;  %v1177_v0 = vld [vmem:[%s2001_s14 + $0xf0] sm:$0xff]  ;;  %v1178_v10 = vld [vmem:[%s2001_s14 + $0xf8] sm:$0xff]  ;;  %v1175_v13 = vld [vmem:[%s2001_s14 + $0xe0] sm:$0xff]  ;;  %vm1461_vm3 = vcmask 261120   ;;  %p1699_p10 = scmp.ne.s32.totalorder %s1962_s30, 1 }
 0x12a   : > { %v1161_v62 = vld [vmem:[%s2001_s14 + $0x70] sm:$0xff]  ;;  %1331 = vperm.xlu0 %1868, %v1177_v0   ;;  %v1162_v11 = vld [vmem:[%s2001_s14 + $0x78] sm:$0xff]  ;;  %v1176_v19 = vld [vmem:[%s2001_s14 + $0xe8] sm:$0xff] }
 0x12b   : > { %1251 = vperm.xlu1 %1869, %v1161_v62   ;;  %v1160_v8 = vld [vmem:[%s2001_s14 + $0x68] sm:$0xff]  ;;  %v1159_v4 = vld [vmem:[%s2001_s14 + $0x60] sm:$0xff]  ;;  %v1174_v22 = vld [vmem:[%s2001_s14 + $0xd8] sm:$0xff] }
 0x12c   : > { %v1173_v15 = vld [vmem:[%s2001_s14 + $0xd0] sm:$0xff]  ;;  %v1158_v24 = vld [vmem:[%s2001_s14 + $0x58] sm:$0xff]  ;;  %v1172_v28 = vld [vmem:[%s2001_s14 + $0xc8] sm:$0xff] }
 0x12d   : > { %v1157_v25 = vld [vmem:[%s2001_s14 + $0x50] sm:$0xff]  ;;  %v1171_v17 = vld [vmem:[%s2001_s14 + $0xc0] sm:$0xff]  ;;  %v1156_v32 = vld [vmem:[%s2001_s14 + $0x48] sm:$0xff] }
 0x12e   : > { %1336 = vperm.xlu0 %1868, %v1178_v10   ;;  %v1155_v33 = vld [vmem:[%s2001_s14 + $0x40] sm:$0xff]  ;;  %v1170_v34 = vld [vmem:[%s2001_s14 + $0xb8] sm:$0xff]  ;;  %v1169_v39 = vld [vmem:[%s2001_s14 + $0xb0] sm:$0xff] }
 0x12f   : > { %1256 = vperm.xlu1 %1869, %v1162_v11   ;;  %v1154_v41 = vld [vmem:[%s2001_s14 + $0x38] sm:$0xff]  ;;  %v1153_v42 = vld [vmem:[%s2001_s14 + $0x30] sm:$0xff]  ;;  %v1168_v36 = vld [vmem:[%s2001_s14 + $0xa8] sm:$0xff] }
 0x130   : > { %v1167_v47 = vld [vmem:[%s2001_s14 + $0xa0] sm:$0xff]  ;;  %v1152_v48 = vld [vmem:[%s2001_s14 + $0x28] sm:$0xff]  ;;  %v1166_v53 = vld [vmem:[%s2001_s14 + $0x98] sm:$0xff] }
 0x131   : > { %v1151_v51 = vld [vmem:[%s2001_s14 + $0x20] sm:$0xff]  ;;  %v1165_v45 = vld [vmem:[%s2001_s14 + $0x90] sm:$0xff]  ;;  %v1150_v56 = vld [vmem:[%s2001_s14 + $0x18] sm:$0xff] }
 0x132   : > { %1321 = vperm.xlu0 %1868, %v1175_v13   ;;  %v1149_v57 = vld [vmem:[%s2001_s14 + $0x10] sm:$0xff]  ;;  %v1164_v60 = vld [vmem:[%s2001_s14 + $0x88] sm:$0xff]  ;;  %v1163_v63 = vld [vmem:[%s2001_s14 + $0x80] sm:$0xff] }
 0x133   : > { %1326 = vperm.xlu1 %1869, %v1176_v19   ;;  %v1148_v5 = vld [vmem:[%s2001_s14 + $0x8] sm:$0xff]  ;;  %v1147_v3 = vld [vmem:[%s2001_s14] sm:$0xff] }
 0x134   : > { %v1872_v0 = vld [vmem:[%s2285_s24 + $0x4] ss:$8 sps:$4 sm:$0xff]  }
 0x135   : > { %1442 = vmatprep.mubr.bf16.mxu1 %v1872_v0 }
 0x136   : > { %1241 = vperm.xlu0 %1868, %v1159_v4  }
 0x137   : > { %1246 = vperm.xlu1 %1869, %v1160_v8  }
 0x13a   : > { %1311 = vperm.xlu0 %1868, %v1173_v15  }
 0x13b   : > { %1316 = vperm.xlu1 %1869, %v1174_v22  }
 0x13e   : > { %1231 = vperm.xlu0 %1868, %v1157_v25  }
 0x13f   : > { %1236 = vperm.xlu1 %1869, %v1158_v24  }
 0x142   : > { %1301 = vperm.xlu0 %1868, %v1171_v17  }
 0x143   : > { %1306 = vperm.xlu1 %1869, %v1172_v28  }
 0x146   : > { %1221 = vperm.xlu0 %1868, %v1155_v33  }
 0x147   : > { %1226 = vperm.xlu1 %1869, %v1156_v32  }
 0x14a   : > { %1291 = vperm.xlu0 %1868, %v1169_v39  }
 0x14b   : > { %1296 = vperm.xlu1 %1869, %v1170_v34  }
 0x14e   : > { %1211 = vperm.xlu0 %1868, %v1153_v42  }
 0x14f   : > { %1216 = vperm.xlu1 %1869, %v1154_v41  }
 0x152   : > { %1281 = vperm.xlu0 %1868, %v1167_v47  }
 0x153   : > { %1286 = vperm.xlu1 %1869, %v1168_v36  }
 0x156   : > { %1201 = vperm.xlu0 %1868, %v1151_v51  }
 0x157   : > { %1206 = vperm.xlu1 %1869, %v1152_v48  }
 0x15a   : > { %1271 = vperm.xlu0 %1868, %v1165_v45  }
 0x15b   : > { %1276 = vperm.xlu1 %1869, %v1166_v53  }
 0x15e   : > { %1191 = vperm.xlu0 %1868, %v1149_v57  }
 0x15f   : > { %1196 = vperm.xlu1 %1869, %v1150_v56  }
 0x162   : > { %1261 = vperm.xlu0 %1868, %v1163_v63  }
 0x163   : > { %1266 = vperm.xlu1 %1869, %v1164_v60  }
 0x166   : > { %1181 = vperm.xlu0 %1868, %v1147_v3  }
 0x167   : > { %1186 = vperm.xlu1 %1869, %v1148_v5  }
 0x1a5   : > { %v1332_v62 = vpop.permute.xlu0 %1331 }
 0x1a6   : > { %v1252_v10 = vpop.permute.xlu1 %1251  ;;  %v1369_v19 = vmul.f32 %v1332_v62, %v2257_v37 }
 0x1a7   : > { %v1353_v8 = vmul.f32 %v1252_v10, %v2159_v58 }
 0x1a9   : > { %v1337_v11 = vpop.permute.xlu0 %1336 }
 0x1aa   : > { %v1257_v13 = vpop.permute.xlu1 %1256  ;;  %v1370_v4 = vmul.f32 %v1337_v11, %v2269_v52 }
 0x1ab   : > { %v1354_v22 = vmul.f32 %v1257_v13, %v2172_v9 }
 0x1ac   : > { %v1386_v15 = vpack.c.bf16 %v1370_v4, %v1369_v19 }
 0x1ad   : > { %v1378_v24 = vpack.c.bf16 %v1354_v22, %v1353_v8  ;;  %v1322_v25 = vpop.permute.xlu0 %1321 }
 0x1ae   : > { %v1327_v28 = vpop.permute.xlu1 %1326  ;;  %v1367_v17 = vmul.f32 %v1322_v25, %v2263_v46  ;;  %1758 = vmatprep.subr.bf16.mxu1 %v1386_v15 }
 0x1af   : > { %v1368_v32 = vmul.f32 %v1327_v28, %v2275_v59  ;;  %1759 = vmatpush3.bf16.msra.mxu1 %v1378_v24 }
 0x1b1   : > { %v1385_v33 = vpack.c.bf16 %v1368_v32, %v1367_v17  ;;  %v1242_v39 = vpop.permute.xlu0 %1241 }
 0x1b2   : > { %v1247_v34 = vpop.permute.xlu1 %1246  ;;  %v1351_v58 = vmul.f32 %v1242_v39, %v2165_v1 }
 0x1b3   : > { %v1352_v37 = vmul.f32 %v1247_v34, %v2178_v14  ;;  %1760 = vmatprep.subr.bf16.mxu1 %v1385_v33 }
 0x1b5   : > { %v1377_v52 = vpack.c.bf16 %v1352_v37, %v1351_v58  ;;  %v1312_v41 = vpop.permute.xlu0 %1311 }
 0x1b6   : > { %v1317_v9 = vpop.permute.xlu1 %1316  ;;  %v1365_v36 = vmul.f32 %v1312_v41, %v2233_v6  ;;  %v1870_v41 = vld [vmem:[%s2285_s24] ss:$8 sps:$4 sm:$0xff]  }
 0x1b7   : > { %v1366_v42 = vmul.f32 %v1317_v9, %v2245_v23  ;;  %1761 = vmatpush3.bf16.msra.mxu1 %v1377_v52 }
 0x1b9   : > { %v1384_v46 = vpack.c.bf16 %v1366_v42, %v1365_v36  ;;  %v1232_v47 = vpop.permute.xlu0 %1231 }
 0x1ba   : > { %v1237_v59 = vpop.permute.xlu1 %1236  ;;  %v1349_v51 = vmul.f32 %v1232_v47, %v2134_v40 }
 0x1bb   : > { %v1350_v48 = vmul.f32 %v1237_v59, %v2146_v49  ;;  %1762 = vmatprep.subr.bf16.mxu1 %v1384_v46 }
 0x1bd   : > { %v1376_v14 = vpack.c.bf16 %v1350_v48, %v1349_v51  ;;  %v1302_v1 = vpop.permute.xlu0 %1301 }
 0x1be   : > { %v1307_v53 = vpop.permute.xlu1 %1306  ;;  %v1363_v56 = vmul.f32 %v1302_v1, %v2239_v18  ;;  %v1389_v1 = vld [vmem:[#allocation2 + $0x10] sm:$0xff] }
 0x1bf   : > { %v1364_v45 = vmul.f32 %v1307_v53, %v2251_v29  ;;  %1763 = vmatpush3.bf16.msra.mxu1 %v1376_v14 }
 0x1c1   : > { %v1383_v23 = vpack.c.bf16 %v1364_v45, %v1363_v56  ;;  %v1222_v6 = vpop.permute.xlu0 %1221 }
 0x1c2   : > { %v1227_v57 = vpop.permute.xlu1 %1226  ;;  %v1347_v63 = vmul.f32 %v1222_v6, %v2140_v44 }
 0x1c3   : > { %v1348_v60 = vmul.f32 %v1227_v57, %v2152_v54  ;;  %1764 = vmatprep.subr.bf16.mxu1 %v1383_v23 }
 0x1c5   : > { %v1375_v49 = vpack.c.bf16 %v1348_v60, %v1347_v63  ;;  %v1292_v40 = vpop.permute.xlu0 %1291 }
 0x1c6   : > { %v1297_v5 = vpop.permute.xlu1 %1296  ;;  %v1361_v0 = vmul.f32 %v1292_v40, %v2209_v43 }
 0x1c7   : > { %v1362_v3 = vmul.f32 %v1297_v5, %v2221_v55  ;;  %1765 = vmatpush3.bf16.msra.mxu1 %v1375_v49 }
 0x1c9   : > { %v1382_v29 = vpack.c.bf16 %v1362_v3, %v1361_v0  ;;  %v1212_v18 = vpop.permute.xlu0 %1211 }
 0x1ca   : > { %v1217_v62 = vpop.permute.xlu1 %1216  ;;  %v1345_v11 = vmul.f32 %v1212_v18, %v2110_v21 }
 0x1cb   : > { %v1346_v10 = vmul.f32 %v1217_v62, %v2122_v30  ;;  %1766 = vmatprep.subr.bf16.mxu1 %v1382_v29 }
 0x1cd   : > { %v1374_v54 = vpack.c.bf16 %v1346_v10, %v1345_v11  ;;  %v1282_v44 = vpop.permute.xlu0 %1281 }
 0x1ce   : > { %v1287_v13 = vpop.permute.xlu1 %1286  ;;  %v1359_v8 = vmul.f32 %v1282_v44, %v2215_v50 }
 0x1cf   : > { %v1360_v19 = vmul.f32 %v1287_v13, %v2227_v61  ;;  %1767 = vmatpush3.bf16.msra.mxu1 %v1374_v54 }
 0x1d1   : > { %v1381_v55 = vpack.c.bf16 %v1360_v19, %v1359_v8  ;;  %v1202_v43 = vpop.permute.xlu0 %1201 }
 0x1d2   : > { %v1207_v4 = vpop.permute.xlu1 %1206  ;;  %v1343_v15 = vmul.f32 %v1202_v43, %v2116_v26 }
 0x1d3   : > { %v1344_v22 = vmul.f32 %v1207_v4, %v2128_v35  ;;  %1768 = vmatprep.subr.bf16.mxu1 %v1381_v55 }
 0x1d5   : > { %v1373_v30 = vpack.c.bf16 %v1344_v22, %v1343_v15  ;;  %v1272_v21 = vpop.permute.xlu0 %1271 }
 0x1d6   : > { %v1277_v24 = vpop.permute.xlu1 %1276  ;;  %v1357_v28 = vmul.f32 %v1272_v21, %v2185_v20 }
 0x1d7   : > { %v1358_v25 = vmul.f32 %v1277_v24, %v2197_v31  ;;  %1769 = vmatpush3.bf16.msra.mxu1 %v1373_v30 }
 0x1d9   : > { %v1380_v61 = vpack.c.bf16 %v1358_v25, %v1357_v28  ;;  %v1192_v50 = vpop.permute.xlu0 %1191 }
 0x1da   : > { %v1197_v17 = vpop.permute.xlu1 %1196  ;;  %v1341_v33 = vmul.f32 %v1192_v50, %v2079_v2 }
 0x1db   : > { %v1342_v32 = vmul.f32 %v1197_v17, %v2096_v12  ;;  %1770 = vmatprep.subr.bf16.mxu1 %v1380_v61  ;;  %v1392_v12 = vld [vmem:[%s2285_s24 + $0x10] sm:$0xff] }
 0x1dc   : > { %v1698_v42 = vcombine.high %v1392_v12, %v1392_v12  ;;  %v1697_v36 = vcombine.low %v1392_v12, %v1392_v12 }
 0x1dd   : > { %v1372_v26 = vpack.c.bf16 %v1342_v32, %v1341_v33  ;;  %v1262_v34 = vpop.permute.xlu0 %1261 }
 0x1de   : > { %v1267_v35 = vpop.permute.xlu1 %1266  ;;  %v1355_v31 = vmul.f32 %v1262_v34, %v2191_v27  ;;  %v1387_v27 = vld [vmem:[#allocation2] sm:$0xff] }
 0x1df   : > { %v1356_v39 = vmul.f32 %v1267_v35, %v2203_v38  ;;  %1771 = vmatpush3.bf16.msra.mxu1 %v1372_v26 }
 0x1e1   : > { %v1379_v20 = vpack.c.bf16 %v1356_v39, %v1355_v31  ;;  %v1182_v58 = vpop.permute.xlu0 %1181 }
 0x1e2   : > { %v1187_v37 = vpop.permute.xlu1 %1186  ;;  %v1339_v9 = vmul.f32 %v1182_v58, %v2083_v7 }
 0x1e3   : > { %v1340_v52 = vmul.f32 %v1187_v37, %v2102_v16  ;;  %1772 = vmatprep.subr.bf16.mxu1 %v1379_v20  ;;  %v1388_v16 = vld [vmem:[#allocation2 + $0x8] sm:$0xff] }
 0x1e5   : > { %v1371_v2 = vpack.c.bf16 %v1340_v52, %v1339_v9 }
 0x1e7   : > { %1773 = vmatpush3.bf16.msra.mxu1 %v1371_v2 }
 0x1ea   : > { %1443 = vmatmul.mubr.bf16.vlgmr.msra.gmra.mxu1 %v1870_v41 }
 0x1eb   : > { %1450 = vmatprep.mubr.bf16.mxu1 %v1698_v42 }
 0x1f2   : > { %1451 = vmatmul.mubr.bf16.gmra.mxu1 %v1697_v36 }
 0x2aa   : > { %v1774_v38 = vpop.f32.mrf.mxu1 }
 0x2ac   : > { %v1775_v46 = vpop.f32.mrf.mxu1 }
 0x2ad   : > { %v1776_v59 = vadd.f32 %v1775_v46, %v1774_v38 }
 0x2ae   : > { %v1777_v47 = vpop.f32.mrf.mxu1 }
 0x2af   : > { %v1458_v48 = vadd.f32 %v1776_v59, %v1387_v27 }
 0x2b0   : > { %v1778_v51 = vpop.f32.mrf.mxu1 }
 0x2b1   : > { %1462 = vst.msk [vmem:[#allocation2] sm:$0xff] %vm1461_vm3, %v1458_v48  ;;  %v1779_v7 = vadd.f32 %v1778_v51, %v1777_v47 }
 0x2b2   : > { %v1780_v14 = vpop.f32.mrf.mxu1 }
 0x2b3   : > { %v1459_v53 = vadd.f32 %v1779_v7, %v1388_v16 }
 0x2b4   : > { %v1781_v45 = vpop.f32.mrf.mxu1 }
 0x2b5   : > { %1463 = vst.msk [vmem:[#allocation2 + $0x8] sm:$0xff] %vm1461_vm3, %v1459_v53  ;;  %v1782_v56 = vadd.f32 %v1781_v45, %v1780_v14  ;;  %1468 = sbr.rel (%p1699_p10) target bundleno = 833 (0x341), region = 94 }
 0x2b6   : > { %v1783_v23 = vpop.f32.mrf.mxu1 }
 0x2b7   : > { %v1460_v57 = vadd.f32 %v1782_v56, %v1389_v1 }
 0x2b8   : > { %v1784_v6 = vpop.f32.mrf.mxu1 }
 0x2b9   : > { %1464 = vst.msk [vmem:[#allocation2 + $0x10] sm:$0xff] %vm1461_vm3, %v1460_v57 }
 0x2ba   : > { %v1469_v60 = vld [vmem:[%s2398_s6] sm:$0xff]  ;;  %v1471_v63 = vld [vmem:[%s2398_s6 + $0x10] sm:$0xff]  ;;  %v1903_v49 = vmov 0   ;;  %v1470_v5 = vld [vmem:[%s2398_s6 + $0x8] sm:$0xff] }
 0x2bb   : > { %1875 = vset.pattern.permute.xlu0 %v1903_v49  ;;  %1876 = vset.pattern.permute.xlu1 %v1903_v49  ;;  %v1472_v40 = vld [vmem:[#allocation2] sm:$0xff] }
 0x2bc   : > { %1477 = vperm.xlu0 %1875, %v1469_v60   ;;  %1487 = vperm.xlu1 %1876, %v1471_v63   ;;  %v1473_v10 = vld [vmem:[#allocation2 + $0x8] sm:$0xff] }
 0x2c0   : > { %1482 = vperm.xlu0 %1875, %v1470_v5   ;;  %v1474_v3 = vld [vmem:[#allocation2 + $0x10] sm:$0xff] }
 0x337   : > { %v1478_v0 = vpop.permute.xlu0 %1477  ;;  %v1488_v29 = vpop.permute.xlu1 %1487 }
 0x338   : > { %v1490_v62 = vmul.f32 %v1478_v0, %v1472_v40  ;;  %v1492_v18 = vmul.f32 %v1488_v29, %v1474_v3 }
 0x33a   : > { %v1738_v11 = vpack.c.bf16 %v1490_v62, %v1490_v62  ;;  %v1740_v54 = vpack.c.bf16 %v1492_v18, %v1492_v18 }
 0x33b   : > { %v1483_v13 = vpop.permute.xlu0 %1482 }
 0x33c   : > { %1506 = vst.msk [vmem:[%s2400_s8] sm:$0xf] %vm1106_vm1, %v1738_v11  ;;  %1508 = vst.msk [vmem:[%s2400_s8 + $0x8] sm:$0xf] %vm1106_vm1, %v1740_v54  ;;  %v1491_v44 = vmul.f32 %v1483_v13, %v1473_v10 }
 0x33e   : > { %v1739_v19 = vpack.c.bf16 %v1491_v44, %v1491_v44 }
 0x340   : > { %1507 = vst.msk [vmem:[%s2400_s8 + $0x4] sm:$0xf] %vm1106_vm1, %v1739_v19 }
 0x341 PF: > { %p16_p11 = scmp.ge.s32.totalorder %s1964_s9, 4   ;;  %s2401_s27 = smov %s1895_s28 }
 0x342   : > { %s2402_s28 = smov %s1971_s12  ;;  %s2403_s29 = smov %s1964_s9 }
 0x343   :  { %18 = sbr.rel (!%p16_p11) target bundleno = 2 (0x2), region = 146 }

// kernel: gcn_hgnnconv_forward.3
= control target key start
LH: loop header
LB: loop body
LE: loop exit
PB: predicated region body
PF: predicated region fallthrough
CT: control target
= control target key end

     0   :  { %s3478_s0 = inlined_call_operand.vmem [shape: s8[512,512], index: 0, kind: input, shape index: {}]   ;;  %s3479_s1 = inlined_call_operand.vmem [shape: bf16[512,32], index: 1, kind: input, shape index: {}]   ;;  %s3480_s2 = inlined_call_operand.vmem [shape: f32[512,1], index: 2, kind: input, shape index: {}]   ;;  %s3481_s3 = inlined_call_operand.vmem [shape: bf16[512,24], index: 3, kind: input, shape index: {}]   ;;  %s3482_s4 = inlined_call_operand.vmem [shape: bf16[24,32], index: 4, kind: input, shape index: {}]   ;;  %s3483_s5 = inlined_call_operand.vmem [shape: f32[512,1], index: 5, kind: input, shape index: {}]   ;;  %s3484_s6 = inlined_call_operand.vmem [shape: f32[512,32], index: 6, kind: output, shape index: {}]  }
   0x1   :  { %3485 = sst [smem:[#allocation4_spill]] %s3478_s0 }
   0x2   :  { %s2734_s21 = smov 0   ;;  %s2736_s22 = smov 0  }
   0x3   :  { %s2738_s23 = smov 0   ;;  %s2740_s24 = smov 0  }
   0x4   :  { %s2742_s25 = smov 0   ;;  %s2744_s26 = smov 0  }
   0x5   :  { %s2746_s27 = smov 0  }
   0x6 LB: > { %s25_s28 = sadd.s32 1, %s2687_s25  ;;  %s28_s29 = sadd.s32 1, %s2691_s26  ;;  %s2695_s27 = sphi %s2746_s27, %s16_s27   ;;  %s2691_s26 = sphi %s2744_s26, %s3494_s26   ;;  %s2687_s25 = sphi %s2742_s25, %s3493_s25   ;;  %s2683_s24 = sphi %s2740_s24, %s3492_s24   ;;  %s2679_s23 = sphi %s2738_s23, %s3491_s23   ;;  %s2675_s22 = sphi %s2736_s22, %s3490_s22   ;;  %s2671_s21 = sphi %s2734_s21, %s3489_s21  }
   0x7   : > { %p26_p0 = scmp.ge.s32.totalorder %s25_s28, 2  ;;  %p44_p1 = scmp.ne.s32.totalorder %s2675_s22, %s2671_s21 }
   0x8   : > { %p45_p2 = scmp.eq.s32.totalorder %s2695_s27, 0  ;;  %s37_s9 = sadd.s32 1, %s2675_s22 }
   0x9   : > { %s3496_s28 = smov (%p26_p0, %s25_s28), 0  ;;  %s3498_s29 = smov (!%p26_p0, %s28_s29), %s2691_s26 }
   0xa   : > { %p46_p3 = por %p45_p2, %p44_p1  ;;  %p30_p4 = scmp.ge.s32.totalorder %s3498_s29, 2 }
   0xb   : > { %s33_s30 = ssub.s32 %s2687_s25, %s3496_s28  ;;  %p2254_p6 = scmp.ge.s32.totalorder %s2695_s27, 4 }
   0xc   : > { %s3500_s29 = smov (%p30_p4, %s3498_s29), 0 }
   0xd   : > { %s32_s7 = ssub.s32 %s2691_s26, %s3500_s29  ;;  %224 = sbr.rel (%p2254_p6) target bundleno = 49 (0x31), region = 20 }
   0xe   : > { %s34_s8 = sor.u32 %s33_s30, %s32_s7 }
   0xf   : > { %p35_p5 = scmp.eq.s32.totalorder %s34_s8, 0 }
  0x11   : > { %s2785_s10 = scalar_select %p35_p5, %s2675_s22, %s37_s9  }
  0x12   : > { %227 = sbr.rel (!%p46_p3) target bundleno = 49 (0x31), region = 24  ;;  %s229_s11 = sand.u32 (%p46_p3), 1, %s2675_s22  }
  0x13   : > { %s2257_s12 = sshll.u32 (%p46_p3), %s2687_s25, 1  ;;  %s2255_s13 = sshll.u32 (%p46_p3), %s229_s11, 7 }
  0x14   : > { %s2358_s14 = sshll.u32 (%p46_p3), %s2691_s26, 7  ;;  %s3486_s0 = sld [smem:[#allocation4_spill]] (%p46_p3) }
  0x15   : > { %s235_s15 = sadd.s32 (%p46_p3), %s2358_s14, %s2257_s12  ;;  %s2799_s20 = scalar_lea.vmem (%p46_p3), [#allocation2], %s2255_s13 }
  0x16   : > { %s2259_s16 = sshll.u32 (%p46_p3), %s235_s15, 1 }
  0x1a   : > { %s2794_s19 = scalar_lea.vmem %s3486_s0, %s2259_s16 }
  0x1b   : > { %v254_v0 = vld [vmem:[%s2794_s19] sm:$0xf]  ;;  %v256_v1 = vld [vmem:[%s2794_s19 + $0x8] sm:$0xf]  ;;  %v258_v2 = vld [vmem:[%s2794_s19 + $0x10] sm:$0xf] }
  0x1c   : > { %255 = vst [vmem:[%s2799_s20] sm:$0xf] %v254_v0  ;;  %257 = vst [vmem:[%s2799_s20 + $0x4] sm:$0xf] %v256_v1  ;;  %v260_v3 = vld [vmem:[%s2794_s19 + $0x18] sm:$0xf] }
  0x1d   : > { %259 = vst [vmem:[%s2799_s20 + $0x8] sm:$0xf] %v258_v2  ;;  %v262_v4 = vld [vmem:[%s2794_s19 + $0x20] sm:$0xf]  ;;  %v264_v5 = vld [vmem:[%s2794_s19 + $0x28] sm:$0xf] }
  0x1e   : > { %261 = vst [vmem:[%s2799_s20 + $0xc] sm:$0xf] %v260_v3  ;;  %263 = vst [vmem:[%s2799_s20 + $0x10] sm:$0xf] %v262_v4  ;;  %v266_v6 = vld [vmem:[%s2794_s19 + $0x30] sm:$0xf] }
  0x1f   : > { %265 = vst [vmem:[%s2799_s20 + $0x14] sm:$0xf] %v264_v5  ;;  %v268_v7 = vld [vmem:[%s2794_s19 + $0x38] sm:$0xf]  ;;  %v270_v8 = vld [vmem:[%s2794_s19 + $0x40] sm:$0xf] }
  0x20   : > { %267 = vst [vmem:[%s2799_s20 + $0x18] sm:$0xf] %v266_v6  ;;  %269 = vst [vmem:[%s2799_s20 + $0x1c] sm:$0xf] %v268_v7  ;;  %v272_v9 = vld [vmem:[%s2794_s19 + $0x48] sm:$0xf] }
  0x21   : > { %271 = vst [vmem:[%s2799_s20 + $0x20] sm:$0xf] %v270_v8  ;;  %v274_v10 = vld [vmem:[%s2794_s19 + $0x50] sm:$0xf]  ;;  %v276_v11 = vld [vmem:[%s2794_s19 + $0x58] sm:$0xf] }
  0x22   : > { %273 = vst [vmem:[%s2799_s20 + $0x24] sm:$0xf] %v272_v9  ;;  %275 = vst [vmem:[%s2799_s20 + $0x28] sm:$0xf] %v274_v10  ;;  %v278_v12 = vld [vmem:[%s2794_s19 + $0x60] sm:$0xf] }
  0x23   : > { %277 = vst [vmem:[%s2799_s20 + $0x2c] sm:$0xf] %v276_v11  ;;  %v280_v13 = vld [vmem:[%s2794_s19 + $0x68] sm:$0xf]  ;;  %v282_v14 = vld [vmem:[%s2794_s19 + $0x70] sm:$0xf] }
  0x24   : > { %279 = vst [vmem:[%s2799_s20 + $0x30] sm:$0xf] %v278_v12  ;;  %281 = vst [vmem:[%s2799_s20 + $0x34] sm:$0xf] %v280_v13  ;;  %v284_v15 = vld [vmem:[%s2794_s19 + $0x78] sm:$0xf] }
  0x25   : > { %283 = vst [vmem:[%s2799_s20 + $0x38] sm:$0xf] %v282_v14  ;;  %v286_v16 = vld [vmem:[%s2794_s19 + $0x80] sm:$0xf]  ;;  %v288_v17 = vld [vmem:[%s2794_s19 + $0x88] sm:$0xf] }
  0x26   : > { %285 = vst [vmem:[%s2799_s20 + $0x3c] sm:$0xf] %v284_v15  ;;  %287 = vst [vmem:[%s2799_s20 + $0x40] sm:$0xf] %v286_v16  ;;  %v290_v18 = vld [vmem:[%s2794_s19 + $0x90] sm:$0xf] }
  0x27   : > { %289 = vst [vmem:[%s2799_s20 + $0x44] sm:$0xf] %v288_v17  ;;  %v292_v19 = vld [vmem:[%s2794_s19 + $0x98] sm:$0xf]  ;;  %v294_v20 = vld [vmem:[%s2794_s19 + $0xa0] sm:$0xf] }
  0x28   : > { %291 = vst [vmem:[%s2799_s20 + $0x48] sm:$0xf] %v290_v18  ;;  %293 = vst [vmem:[%s2799_s20 + $0x4c] sm:$0xf] %v292_v19  ;;  %v296_v21 = vld [vmem:[%s2794_s19 + $0xa8] sm:$0xf] }
  0x29   : > { %295 = vst [vmem:[%s2799_s20 + $0x50] sm:$0xf] %v294_v20  ;;  %v298_v22 = vld [vmem:[%s2794_s19 + $0xb0] sm:$0xf]  ;;  %v300_v23 = vld [vmem:[%s2794_s19 + $0xb8] sm:$0xf] }
  0x2a   : > { %297 = vst [vmem:[%s2799_s20 + $0x54] sm:$0xf] %v296_v21  ;;  %299 = vst [vmem:[%s2799_s20 + $0x58] sm:$0xf] %v298_v22  ;;  %v302_v24 = vld [vmem:[%s2794_s19 + $0xc0] sm:$0xf] }
  0x2b   : > { %301 = vst [vmem:[%s2799_s20 + $0x5c] sm:$0xf] %v300_v23  ;;  %v304_v25 = vld [vmem:[%s2794_s19 + $0xc8] sm:$0xf]  ;;  %v306_v26 = vld [vmem:[%s2794_s19 + $0xd0] sm:$0xf] }
  0x2c   : > { %303 = vst [vmem:[%s2799_s20 + $0x60] sm:$0xf] %v302_v24  ;;  %305 = vst [vmem:[%s2799_s20 + $0x64] sm:$0xf] %v304_v25  ;;  %v308_v27 = vld [vmem:[%s2794_s19 + $0xd8] sm:$0xf] }
  0x2d   : > { %307 = vst [vmem:[%s2799_s20 + $0x68] sm:$0xf] %v306_v26  ;;  %v310_v28 = vld [vmem:[%s2794_s19 + $0xe0] sm:$0xf]  ;;  %v312_v29 = vld [vmem:[%s2794_s19 + $0xe8] sm:$0xf] }
  0x2e   : > { %309 = vst [vmem:[%s2799_s20 + $0x6c] sm:$0xf] %v308_v27  ;;  %311 = vst [vmem:[%s2799_s20 + $0x70] sm:$0xf] %v310_v28  ;;  %v314_v30 = vld [vmem:[%s2794_s19 + $0xf0] sm:$0xf] }
  0x2f   : > { %313 = vst [vmem:[%s2799_s20 + $0x74] sm:$0xf] %v312_v29  ;;  %v316_v31 = vld [vmem:[%s2794_s19 + $0xf8] sm:$0xf]  ;;  %315 = vst [vmem:[%s2799_s20 + $0x78] sm:$0xf] %v314_v30 }
  0x30   : > { %317 = vst [vmem:[%s2799_s20 + $0x7c] sm:$0xf] %v316_v31 }
  0x31 PF: > { %p2260_p7 = scmp.ge.s32.totalorder %s2695_s27, 1  ;;  %p440_p8 = scmp.lt.s32.totalorder %s2695_s27, 5 }
  0x33   : > { %p441_p9 = pnand %p2260_p7, %p440_p8 }
  0x34   : > { %s447_s30 = sand.u32 (!%p441_p9), 1, %s2671_s21   ;;  %s2262_s7 = sshll.u32 (!%p441_p9), %s2679_s23, 5 }
  0x35   : > { %444 = sbr.rel (%p441_p9) target bundleno = 638 (0x27e), region = 81  ;;  %s2261_s8 = sshll.u32 (!%p441_p9), %s447_s30, 7 }
  0x36   : > { %p499_p10 = scmp.lt.s32.totalorder (!%p441_p9), %s2262_s7, 63  ;;  %s2264_s9 = sshll.u32 (!%p441_p9), %s2683_s24, 5 }
  0x37   : > { %p505_p11 = scmp.lt.s32.totalorder (!%p441_p9), %s2264_s9, 63  ;;  %p2272_p12 = scmp.ne.s32.totalorder (!%p441_p9), %s2679_s23, 0 }
  0x3a   : > { %s3502_s7 = smov (!%p499_p10, %s2262_s7), 63  ;;  %s3504_s9 = smov (!%p505_p11, %s2264_s9), 63 }
  0x3b   : > { %s2263_s11 = sshll.u32 %s3502_s7, 2  ;;  %s2265_s15 = sshll.u32 %s3504_s9, 3 }
  0x3c   : > { %s2870_s14 = scalar_lea.vmem %s3479_s1, %s2263_s11  ;;  %s2267_s16 = sshll.u32 %s3504_s9, 2 }
  0x3d   : > { %s2875_s19 = scalar_lea.vmem %s3480_s2, %s2265_s15  ;;  %s2880_s24 = scalar_lea.vmem %s3481_s3, %s2267_s16 }
  0x3e   : > { %s2885_s0 = scalar_lea.vmem %s3483_s5, %s2265_s15  ;;  %s2890_s13 = scalar_lea.vmem %s3484_s6, %s2265_s15 }
  0x3f   : > { %s2892_s9 = scalar_lea.vmem [#allocation2], %s2261_s8  ;;  %532 = sbr.rel (%p2272_p12) target bundleno = 85 (0x55), region = 89 }
  0x44   : > { %vm533_vm0 = vcmask 261120   ;;  %v2697_v32 = vmov 0.0  }
  0x45   : > { %534 = vst.msk [vmem:[%s2890_s13] sm:$0xff] %vm533_vm0, %v2697_v32  ;;  %535 = vst.msk [vmem:[%s2890_s13 + $0x8] sm:$0xff] %vm533_vm0, %v2697_v32 }
  0x46   : > { %536 = vst.msk [vmem:[%s2890_s13 + $0x10] sm:$0xff] %vm533_vm0, %v2697_v32  ;;  %537 = vst.msk [vmem:[%s2890_s13 + $0x18] sm:$0xff] %vm533_vm0, %v2697_v32 }
  0x47   : > { %538 = vst.msk [vmem:[%s2890_s13 + $0x20] sm:$0xff] %vm533_vm0, %v2697_v32  ;;  %539 = vst.msk [vmem:[%s2890_s13 + $0x28] sm:$0xff] %vm533_vm0, %v2697_v32 }
  0x48   : > { %540 = vst.msk [vmem:[%s2890_s13 + $0x30] sm:$0xff] %vm533_vm0, %v2697_v32  ;;  %541 = vst.msk [vmem:[%s2890_s13 + $0x38] sm:$0xff] %vm533_vm0, %v2697_v32 }
  0x49   : > { %542 = vst.msk [vmem:[%s2890_s13 + $0x40] sm:$0xff] %vm533_vm0, %v2697_v32  ;;  %543 = vst.msk [vmem:[%s2890_s13 + $0x48] sm:$0xff] %vm533_vm0, %v2697_v32 }
  0x4a   : > { %544 = vst.msk [vmem:[%s2890_s13 + $0x50] sm:$0xff] %vm533_vm0, %v2697_v32  ;;  %545 = vst.msk [vmem:[%s2890_s13 + $0x58] sm:$0xff] %vm533_vm0, %v2697_v32 }
  0x4b   : > { %546 = vst.msk [vmem:[%s2890_s13 + $0x60] sm:$0xff] %vm533_vm0, %v2697_v32  ;;  %547 = vst.msk [vmem:[%s2890_s13 + $0x68] sm:$0xff] %vm533_vm0, %v2697_v32 }
  0x4c   : > { %548 = vst.msk [vmem:[%s2890_s13 + $0x70] sm:$0xff] %vm533_vm0, %v2697_v32  ;;  %549 = vst.msk [vmem:[%s2890_s13 + $0x78] sm:$0xff] %vm533_vm0, %v2697_v32 }
  0x4d   : > { %550 = vst.msk [vmem:[%s2890_s13 + $0x80] sm:$0xff] %vm533_vm0, %v2697_v32  ;;  %551 = vst.msk [vmem:[%s2890_s13 + $0x88] sm:$0xff] %vm533_vm0, %v2697_v32 }
  0x4e   : > { %552 = vst.msk [vmem:[%s2890_s13 + $0x90] sm:$0xff] %vm533_vm0, %v2697_v32  ;;  %553 = vst.msk [vmem:[%s2890_s13 + $0x98] sm:$0xff] %vm533_vm0, %v2697_v32 }
  0x4f   : > { %554 = vst.msk [vmem:[%s2890_s13 + $0xa0] sm:$0xff] %vm533_vm0, %v2697_v32  ;;  %555 = vst.msk [vmem:[%s2890_s13 + $0xa8] sm:$0xff] %vm533_vm0, %v2697_v32 }
  0x50   : > { %556 = vst.msk [vmem:[%s2890_s13 + $0xb0] sm:$0xff] %vm533_vm0, %v2697_v32  ;;  %557 = vst.msk [vmem:[%s2890_s13 + $0xb8] sm:$0xff] %vm533_vm0, %v2697_v32 }
  0x51   : > { %558 = vst.msk [vmem:[%s2890_s13 + $0xc0] sm:$0xff] %vm533_vm0, %v2697_v32  ;;  %559 = vst.msk [vmem:[%s2890_s13 + $0xc8] sm:$0xff] %vm533_vm0, %v2697_v32 }
  0x52   : > { %560 = vst.msk [vmem:[%s2890_s13 + $0xd0] sm:$0xff] %vm533_vm0, %v2697_v32  ;;  %561 = vst.msk [vmem:[%s2890_s13 + $0xd8] sm:$0xff] %vm533_vm0, %v2697_v32 }
  0x53   : > { %562 = vst.msk [vmem:[%s2890_s13 + $0xe0] sm:$0xff] %vm533_vm0, %v2697_v32  ;;  %563 = vst.msk [vmem:[%s2890_s13 + $0xe8] sm:$0xff] %vm533_vm0, %v2697_v32 }
  0x54   : > { %564 = vst.msk [vmem:[%s2890_s13 + $0xf0] sm:$0xff] %vm533_vm0, %v2697_v32  ;;  %565 = vst.msk [vmem:[%s2890_s13 + $0xf8] sm:$0xff] %vm533_vm0, %v2697_v32 }
  0x55 PF: > { %v2605_v33 = vld [vmem:[%s2870_s14 + $0x78] sm:$0xff]   ;;  %v2607_v35 = vld [vmem:[%s2870_s14 + $0x70] sm:$0xff]   ;;  %v2609_v37 = vld [vmem:[%s2870_s14 + $0x68] sm:$0xff]   ;;  %vm1143_vm1 = vcmask 261120   ;;  %p2321_p13 = scmp.ne.s32.totalorder %s2679_s23, 1 }
  0x56   : > { %v2606_v34 = vld [vmem:[%s2870_s14 + $0x38] sm:$0xff]   ;;  %2359 = vmatprep.subr.bf16.mxu0 %v2605_v33  ;;  %2525 = vmatprep.subr.bf16.mxu1 %v2605_v33  ;;  %v2608_v36 = vld [vmem:[%s2870_s14 + $0x30] sm:$0xff]   ;;  %v2610_v38 = vld [vmem:[%s2870_s14 + $0x28] sm:$0xff]  }
  0x57   : > { %2360 = vmatpush3.bf16.msra.mxu0 %v2606_v34  ;;  %2533 = vmatpush3.bf16.msra.mxu1 %v2606_v34  ;;  %v2611_v39 = vld [vmem:[%s2870_s14 + $0x60] sm:$0xff]   ;;  %v2613_v41 = vld [vmem:[%s2870_s14 + $0x58] sm:$0xff]   ;;  %v2615_v43 = vld [vmem:[%s2870_s14 + $0x50] sm:$0xff]  }
  0x58   : > { %2361 = vmatprep.subr.bf16.mxu0 %v2607_v35  ;;  %2526 = vmatprep.subr.bf16.mxu1 %v2607_v35  ;;  %v2612_v40 = vld [vmem:[%s2870_s14 + $0x20] sm:$0xff]   ;;  %v2614_v42 = vld [vmem:[%s2870_s14 + $0x18] sm:$0xff]   ;;  %v2616_v50 = vld [vmem:[%s2870_s14 + $0x10] sm:$0xff]  }
  0x59   : > { %v598_v44 = vld [vmem:[%s2892_s9] sm:$0xff]   ;;  %v2617_v53 = vld [vmem:[%s2870_s14 + $0x48] sm:$0xff]   ;;  %v602_v3 = vld [vmem:[%s2892_s9 + $0x10] sm:$0xff]  }
  0x5a   : > { %v614_v45 = vld [vmem:[%s2892_s9 + $0x40] sm:$0xff]   ;;  %v630_v46 = vunpack.c.l.s8.bf16 %v598_v44  ;;  %v631_v47 = vunpack.c.h.s8.bf16 %v598_v44  ;;  %v2618_v54 = vld [vmem:[%s2870_s14 + $0x8] sm:$0xff]   ;;  %v618_v4 = vld [vmem:[%s2892_s9 + $0x50] sm:$0xff]   ;;  %v634_v5 = vunpack.c.l.s8.bf16 %v602_v3  ;;  %v635_v6 = vunpack.c.h.s8.bf16 %v602_v3 }
  0x5b   : > { %2362 = vmatpush3.bf16.msra.mxu0 %v2608_v36  ;;  %2534 = vmatpush3.bf16.msra.mxu1 %v2608_v36  ;;  %v646_v48 = vunpack.c.l.s8.bf16 %v614_v45  ;;  %v647_v49 = vunpack.c.h.s8.bf16 %v614_v45  ;;  %v2619_v55 = vld [vmem:[%s2870_s14 + $0x40] sm:$0xff]   ;;  %v600_v56 = vld [vmem:[%s2892_s9 + $0x8] sm:$0xff]   ;;  %v650_v7 = vunpack.c.l.s8.bf16 %v618_v4  ;;  %v651_v8 = vunpack.c.h.s8.bf16 %v618_v4  ;;  %v604_v13 = vld [vmem:[%s2892_s9 + $0x18] sm:$0xff]  }
  0x5c   : > { %2363 = vmatprep.subr.bf16.mxu0 %v2609_v37  ;;  %2527 = vmatprep.subr.bf16.mxu1 %v2609_v37  ;;  %v2274_v51 = vcombine.high %v630_v46, %v631_v47  ;;  %v616_v57 = vld [vmem:[%s2892_s9 + $0x48] sm:$0xff]   ;;  %v2620_v58 = vld [vmem:[%s2870_s14] sm:$0xff]   ;;  %v632_v59 = vunpack.c.l.s8.bf16 %v600_v56  ;;  %v633_v60 = vunpack.c.h.s8.bf16 %v600_v56  ;;  %v2273_v63 = vcombine.low %v630_v46, %v631_v47  ;;  %v620_v14 = vld [vmem:[%s2892_s9 + $0x58] sm:$0xff]  }
  0x5d   : > { %v2290_v52 = vcombine.high %v646_v48, %v647_v49  ;;  %v648_v61 = vunpack.c.l.s8.bf16 %v616_v57  ;;  %v649_v62 = vunpack.c.h.s8.bf16 %v616_v57  ;;  %v2289_v0 = vcombine.low %v646_v48, %v647_v49  ;;  %v606_v23 = vld [vmem:[%s2892_s9 + $0x20] sm:$0xff]   ;;  %v608_v33 = vld [vmem:[%s2892_s9 + $0x28] sm:$0xff]   ;;  %v626_v44 = vld [vmem:[%s2892_s9 + $0x70] sm:$0xff]  }
  0x5e   : > { %982 = vmatprep.mubr.bf16.mxu0 %v2274_v51  ;;  %v2276_v1 = vcombine.high %v632_v59, %v633_v60  ;;  %v2275_v9 = vcombine.low %v632_v59, %v633_v60  ;;  %v2278_v11 = vcombine.high %v634_v5, %v635_v6  ;;  %v2294_v12 = vcombine.high %v650_v7, %v651_v8  ;;  %v622_v24 = vld [vmem:[%s2892_s9 + $0x60] sm:$0xff]   ;;  %v624_v34 = vld [vmem:[%s2892_s9 + $0x68] sm:$0xff]  }
  0x5f   : > { %2364 = vmatpush3.bf16.msra.mxu0 %v2610_v38  ;;  %2535 = vmatpush3.bf16.msra.mxu1 %v2610_v38  ;;  %v2292_v2 = vcombine.high %v648_v61, %v649_v62  ;;  %v2291_v10 = vcombine.low %v648_v61, %v649_v62  ;;  %v636_v15 = vunpack.c.l.s8.bf16 %v604_v13  ;;  %v637_v16 = vunpack.c.h.s8.bf16 %v604_v13  ;;  %v566_v3 = vld [vmem:[%s2890_s13] sm:$0xff]  ;;  %v567_v13 = vld [vmem:[%s2890_s13 + $0x8] sm:$0xff] }
  0x60   : > { %2365 = vmatprep.subr.bf16.mxu0 %v2611_v39  ;;  %2528 = vmatprep.subr.bf16.mxu1 %v2611_v39  ;;  %v652_v17 = vunpack.c.l.s8.bf16 %v620_v14  ;;  %v653_v18 = vunpack.c.h.s8.bf16 %v620_v14  ;;  %v2277_v19 = vcombine.low %v634_v5, %v635_v6  ;;  %v2293_v20 = vcombine.low %v650_v7, %v651_v8  ;;  %v582_v5 = vld [vmem:[%s2890_s13 + $0x80] sm:$0xff] }
  0x61   : > { %1046 = vmatprep.mubr.bf16.mxu1 %v2290_v52  ;;  %v2280_v21 = vcombine.high %v636_v15, %v637_v16  ;;  %v638_v25 = vunpack.c.l.s8.bf16 %v606_v23  ;;  %v639_v26 = vunpack.c.h.s8.bf16 %v606_v23  ;;  %v654_v27 = vunpack.c.l.s8.bf16 %v622_v24  ;;  %v568_v23 = vld [vmem:[%s2890_s13 + $0x10] sm:$0xff] }
  0x62   : > { %v2296_v22 = vcombine.high %v652_v17, %v653_v18  ;;  %v655_v28 = vunpack.c.h.s8.bf16 %v622_v24  ;;  %v2279_v29 = vcombine.low %v636_v15, %v637_v16  ;;  %v2295_v30 = vcombine.low %v652_v17, %v653_v18  ;;  %v583_v15 = vld [vmem:[%s2890_s13 + $0x88] sm:$0xff] }
  0x63   : > { %2366 = vmatpush3.bf16.msra.mxu0 %v2612_v40  ;;  %2536 = vmatpush3.bf16.msra.mxu1 %v2612_v40  ;;  %v2282_v31 = vcombine.high %v638_v25, %v639_v26  ;;  %v640_v35 = vunpack.c.l.s8.bf16 %v608_v33  ;;  %v641_v36 = vunpack.c.h.s8.bf16 %v608_v33  ;;  %v656_v37 = vunpack.c.l.s8.bf16 %v624_v34  ;;  %v569_v33 = vld [vmem:[%s2890_s13 + $0x18] sm:$0xff] }
  0x64   : > { %2367 = vmatprep.subr.bf16.mxu0 %v2613_v41  ;;  %2529 = vmatprep.subr.bf16.mxu1 %v2613_v41  ;;  %v2298_v32 = vcombine.high %v654_v27, %v655_v28  ;;  %v657_v38 = vunpack.c.h.s8.bf16 %v624_v34  ;;  %v2281_v39 = vcombine.low %v638_v25, %v639_v26  ;;  %v2297_v40 = vcombine.low %v654_v27, %v655_v28  ;;  %v584_v25 = vld [vmem:[%s2890_s13 + $0x90] sm:$0xff] }
  0x65   : > { %v2284_v41 = vcombine.high %v640_v35, %v641_v36  ;;  %v658_v47 = vunpack.c.l.s8.bf16 %v626_v44  ;;  %v659_v48 = vunpack.c.h.s8.bf16 %v626_v44  ;;  %v2283_v49 = vcombine.low %v640_v35, %v641_v36  ;;  %v585_v35 = vld [vmem:[%s2890_s13 + $0x98] sm:$0xff] }
  0x67   : > { %2368 = vmatpush3.bf16.msra.mxu0 %v2614_v42  ;;  %2537 = vmatpush3.bf16.msra.mxu1 %v2614_v42  ;;  %v2300_v42 = vcombine.high %v656_v37, %v657_v38  ;;  %v2302_v52 = vcombine.high %v658_v47, %v659_v48  ;;  %v2301_v60 = vcombine.low %v658_v47, %v659_v48 }
  0x68   : > { %2369 = vmatprep.subr.bf16.mxu0 %v2615_v43  ;;  %2530 = vmatprep.subr.bf16.mxu1 %v2615_v43  ;;  %v610_v43 = vld [vmem:[%s2892_s9 + $0x30] sm:$0xff]  }
  0x69   : > { %v642_v45 = vunpack.c.l.s8.bf16 %v610_v43  ;;  %v643_v46 = vunpack.c.h.s8.bf16 %v610_v43  ;;  %v570_v43 = vld [vmem:[%s2890_s13 + $0x20] sm:$0xff] }
  0x6b   : > { %2370 = vmatpush3.bf16.msra.mxu0 %v2616_v50  ;;  %2538 = vmatpush3.bf16.msra.mxu1 %v2616_v50  ;;  %v2299_v50 = vcombine.low %v656_v37, %v657_v38  ;;  %v2286_v51 = vcombine.high %v642_v45, %v643_v46  ;;  %v2285_v59 = vcombine.low %v642_v45, %v643_v46  ;;  %v586_v45 = vld [vmem:[%s2890_s13 + $0xa0] sm:$0xff] }
  0x6c   : > { %2371 = vmatprep.subr.bf16.mxu0 %v2617_v53  ;;  %2531 = vmatprep.subr.bf16.mxu1 %v2617_v53  ;;  %v612_v53 = vld [vmem:[%s2892_s9 + $0x38] sm:$0xff]  }
  0x6d   : > { %v645_v56 = vunpack.c.h.s8.bf16 %v612_v53 }
  0x6f   : > { %2372 = vmatpush3.bf16.msra.mxu0 %v2618_v54  ;;  %2539 = vmatpush3.bf16.msra.mxu1 %v2618_v54  ;;  %v628_v54 = vld [vmem:[%s2892_s9 + $0x78] sm:$0xff]  }
  0x70   : > { %2373 = vmatprep.subr.bf16.mxu0 %v2619_v55  ;;  %2532 = vmatprep.subr.bf16.mxu1 %v2619_v55  ;;  %v644_v55 = vunpack.c.l.s8.bf16 %v612_v53  ;;  %v660_v57 = vunpack.c.l.s8.bf16 %v628_v54  ;;  %v571_v53 = vld [vmem:[%s2890_s13 + $0x28] sm:$0xff] }
  0x72   : > { %v2288_v61 = vcombine.high %v644_v55, %v645_v56 }
  0x73   : > { %2374 = vmatpush3.bf16.msra.mxu0 %v2620_v58  ;;  %2540 = vmatpush3.bf16.msra.mxu1 %v2620_v58  ;;  %v661_v58 = vunpack.c.h.s8.bf16 %v628_v54 }
  0x75   : > { %v2304_v62 = vcombine.high %v660_v57, %v661_v58 }
  0x76   : > { %983 = vmatmul.mubr.bf16.vlgmr.msra.gmra.mxu0 %v2273_v63  ;;  %1047 = vmatmul.mubr.bf16.vlgmr.msra.gmra.mxu1 %v2289_v0  ;;  %v2287_v63 = vcombine.low %v644_v55, %v645_v56  ;;  %v2303_v0 = vcombine.low %v660_v57, %v661_v58  ;;  %v587_v55 = vld [vmem:[%s2890_s13 + $0xa8] sm:$0xff] }
  0x77   : > { %990 = vmatprep.mubr.bf16.mxu0 %v2276_v1  ;;  %1054 = vmatprep.mubr.bf16.mxu1 %v2292_v2 }
  0x7e   : > { %991 = vmatmul.mubr.bf16.gmra.mxu0 %v2275_v9  ;;  %1055 = vmatmul.mubr.bf16.gmra.mxu1 %v2291_v10 }
  0x7f   : > { %998 = vmatprep.mubr.bf16.mxu0 %v2278_v11  ;;  %1062 = vmatprep.mubr.bf16.mxu1 %v2294_v12 }
  0x86   : > { %999 = vmatmul.mubr.bf16.gmra.mxu0 %v2277_v19  ;;  %1063 = vmatmul.mubr.bf16.gmra.mxu1 %v2293_v20 }
  0x87   : > { %1006 = vmatprep.mubr.bf16.mxu0 %v2280_v21  ;;  %1070 = vmatprep.mubr.bf16.mxu1 %v2296_v22 }
  0x8e   : > { %1007 = vmatmul.mubr.bf16.gmra.mxu0 %v2279_v29  ;;  %1071 = vmatmul.mubr.bf16.gmra.mxu1 %v2295_v30 }
  0x8f   : > { %1014 = vmatprep.mubr.bf16.mxu0 %v2282_v31  ;;  %1078 = vmatprep.mubr.bf16.mxu1 %v2298_v32 }
  0x96   : > { %1015 = vmatmul.mubr.bf16.gmra.mxu0 %v2281_v39  ;;  %1079 = vmatmul.mubr.bf16.gmra.mxu1 %v2297_v40 }
  0x97   : > { %1022 = vmatprep.mubr.bf16.mxu0 %v2284_v41  ;;  %1086 = vmatprep.mubr.bf16.mxu1 %v2300_v42 }
  0x9e   : > { %1023 = vmatmul.mubr.bf16.gmra.mxu0 %v2283_v49  ;;  %1087 = vmatmul.mubr.bf16.gmra.mxu1 %v2299_v50 }
  0x9f   : > { %1030 = vmatprep.mubr.bf16.mxu0 %v2286_v51  ;;  %1094 = vmatprep.mubr.bf16.mxu1 %v2302_v52 }
  0xa6   : > { %1031 = vmatmul.mubr.bf16.gmra.mxu0 %v2285_v59  ;;  %1095 = vmatmul.mubr.bf16.gmra.mxu1 %v2301_v60 }
  0xa7   : > { %1038 = vmatprep.mubr.bf16.mxu0 %v2288_v61  ;;  %1102 = vmatprep.mubr.bf16.mxu1 %v2304_v62 }
  0xae   : > { %1039 = vmatmul.mubr.bf16.gmra.mxu0 %v2287_v63  ;;  %1103 = vmatmul.mubr.bf16.gmra.mxu1 %v2303_v0  ;;  %v572_v63 = vld [vmem:[%s2890_s13 + $0x30] sm:$0xff] }
 0x136   : > { %v2375_v1 = vpop.f32.mrf.mxu0  ;;  %v2423_v2 = vpop.f32.mrf.mxu1 }
 0x138   : > { %v2376_v4 = vpop.f32.mrf.mxu0  ;;  %v2424_v6 = vpop.f32.mrf.mxu1 }
 0x139   : > { %v2377_v7 = vadd.f32 %v2376_v4, %v2375_v1  ;;  %v2425_v8 = vadd.f32 %v2424_v6, %v2423_v2  ;;  %v588_v1 = vld [vmem:[%s2890_s13 + $0xb0] sm:$0xff] }
 0x13a   : > { %v2378_v9 = vpop.f32.mrf.mxu0  ;;  %v2426_v10 = vpop.f32.mrf.mxu1 }
 0x13b   : > { %v1111_v11 = vadd.f32 %v2377_v7, %v566_v3  ;;  %v1127_v12 = vadd.f32 %v2425_v8, %v582_v5 }
 0x13c   : > { %v2379_v14 = vpop.f32.mrf.mxu0  ;;  %v2427_v16 = vpop.f32.mrf.mxu1 }
 0x13d   : > { %1144 = vst.msk [vmem:[%s2890_s13] sm:$0xff] %vm1143_vm1, %v1111_v11  ;;  %1160 = vst.msk [vmem:[%s2890_s13 + $0x80] sm:$0xff] %vm1143_vm1, %v1127_v12  ;;  %v2380_v17 = vadd.f32 %v2379_v14, %v2378_v9  ;;  %v2428_v18 = vadd.f32 %v2427_v16, %v2426_v10  ;;  %v573_v9 = vld [vmem:[%s2890_s13 + $0x38] sm:$0xff] }
 0x13e   : > { %v2381_v19 = vpop.f32.mrf.mxu0  ;;  %v2429_v20 = vpop.f32.mrf.mxu1  ;;  %v589_v11 = vld [vmem:[%s2890_s13 + $0xb8] sm:$0xff] }
 0x13f   : > { %v1112_v21 = vadd.f32 %v2380_v17, %v567_v13  ;;  %v1128_v22 = vadd.f32 %v2428_v18, %v583_v15 }
 0x140   : > { %v2382_v24 = vpop.f32.mrf.mxu0  ;;  %v2430_v26 = vpop.f32.mrf.mxu1 }
 0x141   : > { %1145 = vst.msk [vmem:[%s2890_s13 + $0x8] sm:$0xff] %vm1143_vm1, %v1112_v21  ;;  %1161 = vst.msk [vmem:[%s2890_s13 + $0x88] sm:$0xff] %vm1143_vm1, %v1128_v22  ;;  %v2383_v27 = vadd.f32 %v2382_v24, %v2381_v19  ;;  %v2431_v28 = vadd.f32 %v2430_v26, %v2429_v20  ;;  %v574_v19 = vld [vmem:[%s2890_s13 + $0x40] sm:$0xff] }
 0x142   : > { %v2384_v29 = vpop.f32.mrf.mxu0  ;;  %v2432_v30 = vpop.f32.mrf.mxu1  ;;  %v590_v21 = vld [vmem:[%s2890_s13 + $0xc0] sm:$0xff] }
 0x143   : > { %v1113_v31 = vadd.f32 %v2383_v27, %v568_v23  ;;  %v1129_v32 = vadd.f32 %v2431_v28, %v584_v25 }
 0x144   : > { %v2385_v34 = vpop.f32.mrf.mxu0  ;;  %v2433_v36 = vpop.f32.mrf.mxu1 }
 0x145   : > { %1146 = vst.msk [vmem:[%s2890_s13 + $0x10] sm:$0xff] %vm1143_vm1, %v1113_v31  ;;  %1162 = vst.msk [vmem:[%s2890_s13 + $0x90] sm:$0xff] %vm1143_vm1, %v1129_v32  ;;  %v2386_v37 = vadd.f32 %v2385_v34, %v2384_v29  ;;  %v2434_v38 = vadd.f32 %v2433_v36, %v2432_v30  ;;  %v575_v29 = vld [vmem:[%s2890_s13 + $0x48] sm:$0xff] }
 0x146   : > { %v2387_v39 = vpop.f32.mrf.mxu0  ;;  %v2435_v40 = vpop.f32.mrf.mxu1  ;;  %v591_v31 = vld [vmem:[%s2890_s13 + $0xc8] sm:$0xff] }
 0x147   : > { %v1114_v41 = vadd.f32 %v2386_v37, %v569_v33  ;;  %v1130_v42 = vadd.f32 %v2434_v38, %v585_v35 }
 0x148   : > { %v2388_v44 = vpop.f32.mrf.mxu0  ;;  %v2436_v46 = vpop.f32.mrf.mxu1 }
 0x149   : > { %1147 = vst.msk [vmem:[%s2890_s13 + $0x18] sm:$0xff] %vm1143_vm1, %v1114_v41  ;;  %1163 = vst.msk [vmem:[%s2890_s13 + $0x98] sm:$0xff] %vm1143_vm1, %v1130_v42  ;;  %v2389_v47 = vadd.f32 %v2388_v44, %v2387_v39  ;;  %v2437_v48 = vadd.f32 %v2436_v46, %v2435_v40  ;;  %v576_v39 = vld [vmem:[%s2890_s13 + $0x50] sm:$0xff] }
 0x14a   : > { %v2390_v49 = vpop.f32.mrf.mxu0  ;;  %v2438_v50 = vpop.f32.mrf.mxu1  ;;  %v592_v41 = vld [vmem:[%s2890_s13 + $0xd0] sm:$0xff] }
 0x14b   : > { %v1115_v51 = vadd.f32 %v2389_v47, %v570_v43  ;;  %v1131_v52 = vadd.f32 %v2437_v48, %v586_v45 }
 0x14c   : > { %v2391_v54 = vpop.f32.mrf.mxu0  ;;  %v2439_v56 = vpop.f32.mrf.mxu1 }
 0x14d   : > { %1148 = vst.msk [vmem:[%s2890_s13 + $0x20] sm:$0xff] %vm1143_vm1, %v1115_v51  ;;  %1164 = vst.msk [vmem:[%s2890_s13 + $0xa0] sm:$0xff] %vm1143_vm1, %v1131_v52  ;;  %v2392_v57 = vadd.f32 %v2391_v54, %v2390_v49  ;;  %v2440_v58 = vadd.f32 %v2439_v56, %v2438_v50  ;;  %v577_v49 = vld [vmem:[%s2890_s13 + $0x58] sm:$0xff] }
 0x14e   : > { %v2393_v59 = vpop.f32.mrf.mxu0  ;;  %v2441_v60 = vpop.f32.mrf.mxu1  ;;  %v593_v51 = vld [vmem:[%s2890_s13 + $0xd8] sm:$0xff] }
 0x14f   : > { %v1116_v61 = vadd.f32 %v2392_v57, %v571_v53  ;;  %v1132_v62 = vadd.f32 %v2440_v58, %v587_v55 }
 0x150   : > { %v2394_v0 = vpop.f32.mrf.mxu0  ;;  %v2442_v2 = vpop.f32.mrf.mxu1 }
 0x151   : > { %1149 = vst.msk [vmem:[%s2890_s13 + $0x28] sm:$0xff] %vm1143_vm1, %v1116_v61  ;;  %1165 = vst.msk [vmem:[%s2890_s13 + $0xa8] sm:$0xff] %vm1143_vm1, %v1132_v62  ;;  %v2395_v3 = vadd.f32 %v2394_v0, %v2393_v59  ;;  %v2443_v4 = vadd.f32 %v2442_v2, %v2441_v60  ;;  %v578_v59 = vld [vmem:[%s2890_s13 + $0x60] sm:$0xff] }
 0x152   : > { %v2396_v5 = vpop.f32.mrf.mxu0  ;;  %v2444_v6 = vpop.f32.mrf.mxu1  ;;  %v594_v61 = vld [vmem:[%s2890_s13 + $0xe0] sm:$0xff] }
 0x153   : > { %v1117_v7 = vadd.f32 %v2395_v3, %v572_v63  ;;  %v1133_v8 = vadd.f32 %v2443_v4, %v588_v1 }
 0x154   : > { %v2397_v10 = vpop.f32.mrf.mxu0  ;;  %v2445_v12 = vpop.f32.mrf.mxu1 }
 0x155   : > { %1150 = vst.msk [vmem:[%s2890_s13 + $0x30] sm:$0xff] %vm1143_vm1, %v1117_v7  ;;  %1166 = vst.msk [vmem:[%s2890_s13 + $0xb0] sm:$0xff] %vm1143_vm1, %v1133_v8  ;;  %v2398_v13 = vadd.f32 %v2397_v10, %v2396_v5  ;;  %v2446_v14 = vadd.f32 %v2445_v12, %v2444_v6  ;;  %v579_v5 = vld [vmem:[%s2890_s13 + $0x68] sm:$0xff] }
 0x156   : > { %v2399_v15 = vpop.f32.mrf.mxu0  ;;  %v2447_v16 = vpop.f32.mrf.mxu1  ;;  %v595_v7 = vld [vmem:[%s2890_s13 + $0xe8] sm:$0xff] }
 0x157   : > { %v1118_v17 = vadd.f32 %v2398_v13, %v573_v9  ;;  %v1134_v18 = vadd.f32 %v2446_v14, %v589_v11 }
 0x158   : > { %v2400_v20 = vpop.f32.mrf.mxu0  ;;  %v2448_v22 = vpop.f32.mrf.mxu1 }
 0x159   : > { %1151 = vst.msk [vmem:[%s2890_s13 + $0x38] sm:$0xff] %vm1143_vm1, %v1118_v17  ;;  %1167 = vst.msk [vmem:[%s2890_s13 + $0xb8] sm:$0xff] %vm1143_vm1, %v1134_v18  ;;  %v2401_v23 = vadd.f32 %v2400_v20, %v2399_v15  ;;  %v2449_v24 = vadd.f32 %v2448_v22, %v2447_v16  ;;  %v580_v15 = vld [vmem:[%s2890_s13 + $0x70] sm:$0xff] }
 0x15a   : > { %v2402_v25 = vpop.f32.mrf.mxu0  ;;  %v2450_v26 = vpop.f32.mrf.mxu1  ;;  %v596_v17 = vld [vmem:[%s2890_s13 + $0xf0] sm:$0xff] }
 0x15b   : > { %v1119_v27 = vadd.f32 %v2401_v23, %v574_v19  ;;  %v1135_v28 = vadd.f32 %v2449_v24, %v590_v21 }
 0x15c   : > { %v2403_v30 = vpop.f32.mrf.mxu0  ;;  %v2451_v32 = vpop.f32.mrf.mxu1 }
 0x15d   : > { %1152 = vst.msk [vmem:[%s2890_s13 + $0x40] sm:$0xff] %vm1143_vm1, %v1119_v27  ;;  %1168 = vst.msk [vmem:[%s2890_s13 + $0xc0] sm:$0xff] %vm1143_vm1, %v1135_v28  ;;  %v2404_v33 = vadd.f32 %v2403_v30, %v2402_v25  ;;  %v2452_v34 = vadd.f32 %v2451_v32, %v2450_v26  ;;  %v581_v25 = vld [vmem:[%s2890_s13 + $0x78] sm:$0xff] }
 0x15e   : > { %v2405_v35 = vpop.f32.mrf.mxu0  ;;  %v2453_v36 = vpop.f32.mrf.mxu1  ;;  %v597_v27 = vld [vmem:[%s2890_s13 + $0xf8] sm:$0xff] }
 0x15f   : > { %v1120_v37 = vadd.f32 %v2404_v33, %v575_v29  ;;  %v1136_v38 = vadd.f32 %v2452_v34, %v591_v31 }
 0x160   : > { %v2406_v40 = vpop.f32.mrf.mxu0  ;;  %v2454_v42 = vpop.f32.mrf.mxu1 }
 0x161   : > { %1153 = vst.msk [vmem:[%s2890_s13 + $0x48] sm:$0xff] %vm1143_vm1, %v1120_v37  ;;  %1169 = vst.msk [vmem:[%s2890_s13 + $0xc8] sm:$0xff] %vm1143_vm1, %v1136_v38  ;;  %v2407_v43 = vadd.f32 %v2406_v40, %v2405_v35  ;;  %v2455_v44 = vadd.f32 %v2454_v42, %v2453_v36 }
 0x162   : > { %v2408_v45 = vpop.f32.mrf.mxu0  ;;  %v2456_v46 = vpop.f32.mrf.mxu1 }
 0x163   : > { %v1121_v47 = vadd.f32 %v2407_v43, %v576_v39  ;;  %v1137_v48 = vadd.f32 %v2455_v44, %v592_v41 }
 0x164   : > { %v2409_v50 = vpop.f32.mrf.mxu0  ;;  %v2457_v52 = vpop.f32.mrf.mxu1 }
 0x165   : > { %1154 = vst.msk [vmem:[%s2890_s13 + $0x50] sm:$0xff] %vm1143_vm1, %v1121_v47  ;;  %1170 = vst.msk [vmem:[%s2890_s13 + $0xd0] sm:$0xff] %vm1143_vm1, %v1137_v48  ;;  %v2410_v53 = vadd.f32 %v2409_v50, %v2408_v45  ;;  %v2458_v54 = vadd.f32 %v2457_v52, %v2456_v46 }
 0x166   : > { %v2411_v55 = vpop.f32.mrf.mxu0  ;;  %v2459_v56 = vpop.f32.mrf.mxu1 }
 0x167   : > { %v1122_v57 = vadd.f32 %v2410_v53, %v577_v49  ;;  %v1138_v58 = vadd.f32 %v2458_v54, %v593_v51 }
 0x168   : > { %v2412_v60 = vpop.f32.mrf.mxu0  ;;  %v2460_v62 = vpop.f32.mrf.mxu1 }
 0x169   : > { %1155 = vst.msk [vmem:[%s2890_s13 + $0x58] sm:$0xff] %vm1143_vm1, %v1122_v57  ;;  %1171 = vst.msk [vmem:[%s2890_s13 + $0xd8] sm:$0xff] %vm1143_vm1, %v1138_v58  ;;  %v2413_v63 = vadd.f32 %v2412_v60, %v2411_v55  ;;  %v2461_v0 = vadd.f32 %v2460_v62, %v2459_v56 }
 0x16a   : > { %v2414_v1 = vpop.f32.mrf.mxu0  ;;  %v2462_v2 = vpop.f32.mrf.mxu1 }
 0x16b   : > { %v1123_v3 = vadd.f32 %v2413_v63, %v578_v59  ;;  %v1139_v4 = vadd.f32 %v2461_v0, %v594_v61 }
 0x16c   : > { %v2415_v6 = vpop.f32.mrf.mxu0  ;;  %v2463_v8 = vpop.f32.mrf.mxu1 }
 0x16d   : > { %1156 = vst.msk [vmem:[%s2890_s13 + $0x60] sm:$0xff] %vm1143_vm1, %v1123_v3  ;;  %1172 = vst.msk [vmem:[%s2890_s13 + $0xe0] sm:$0xff] %vm1143_vm1, %v1139_v4  ;;  %v2416_v9 = vadd.f32 %v2415_v6, %v2414_v1  ;;  %v2464_v10 = vadd.f32 %v2463_v8, %v2462_v2 }
 0x16e   : > { %v2417_v11 = vpop.f32.mrf.mxu0  ;;  %v2465_v12 = vpop.f32.mrf.mxu1 }
 0x16f   : > { %v1124_v13 = vadd.f32 %v2416_v9, %v579_v5  ;;  %v1140_v14 = vadd.f32 %v2464_v10, %v595_v7 }
 0x170   : > { %v2418_v16 = vpop.f32.mrf.mxu0  ;;  %v2466_v18 = vpop.f32.mrf.mxu1 }
 0x171   : > { %1157 = vst.msk [vmem:[%s2890_s13 + $0x68] sm:$0xff] %vm1143_vm1, %v1124_v13  ;;  %1173 = vst.msk [vmem:[%s2890_s13 + $0xe8] sm:$0xff] %vm1143_vm1, %v1140_v14  ;;  %v2419_v19 = vadd.f32 %v2418_v16, %v2417_v11  ;;  %v2467_v20 = vadd.f32 %v2466_v18, %v2465_v12 }
 0x172   : > { %v2420_v21 = vpop.f32.mrf.mxu0  ;;  %v2468_v22 = vpop.f32.mrf.mxu1 }
 0x173   : > { %v1125_v23 = vadd.f32 %v2419_v19, %v580_v15  ;;  %v1141_v24 = vadd.f32 %v2467_v20, %v596_v17 }
 0x174   : > { %v2421_v26 = vpop.f32.mrf.mxu0  ;;  %v2469_v28 = vpop.f32.mrf.mxu1 }
 0x175   : > { %1158 = vst.msk [vmem:[%s2890_s13 + $0x70] sm:$0xff] %vm1143_vm1, %v1125_v23  ;;  %1174 = vst.msk [vmem:[%s2890_s13 + $0xf0] sm:$0xff] %vm1143_vm1, %v1141_v24  ;;  %v2422_v29 = vadd.f32 %v2421_v26, %v2420_v21  ;;  %v2470_v30 = vadd.f32 %v2469_v28, %v2468_v22  ;;  %1179 = sbr.rel (%p2321_p13) target bundleno = 638 (0x27e), region = 93 }
 0x177   : > { %v1126_v31 = vadd.f32 %v2422_v29, %v581_v25  ;;  %v1142_v32 = vadd.f32 %v2470_v30, %v597_v27 }
 0x179   : > { %1159 = vst.msk [vmem:[%s2890_s13 + $0x78] sm:$0xff] %vm1143_vm1, %v1126_v31  ;;  %1175 = vst.msk [vmem:[%s2890_s13 + $0xf8] sm:$0xff] %vm1143_vm1, %v1142_v32 }
 0x17a   : > { %v1182_v33 = vld [vmem:[%s2875_s19 + $0x10] sm:$0xff]  ;;  %v1180_v34 = vld [vmem:[%s2875_s19] sm:$0xff]  ;;  %vm1641_vm2 = vcmask 1043456   ;;  %v2698_v35 = vmov 0   ;;  %v2623_v36 = vld [vmem:[%s3482_s4 + $0x8] ss:$0 sps:$4 sm:$0xff]  }
 0x17b   : > { %2622 = vset.pattern.permute.xlu1 %v2698_v35  ;;  %2621 = vset.pattern.permute.xlu0 %v2698_v35  ;;  %v1183_v37 = vld [vmem:[%s2875_s19 + $0x18] sm:$0xff]  ;;  %v1181_v38 = vld [vmem:[%s2875_s19 + $0x8] sm:$0xff]  ;;  %v2624_v39 = vld [vmem:[%s3482_s4] sm:$0xff]   ;;  %vm1592_vm3 = vcmask 195584   ;;  %v1643_v40 = vsel %vm1641_vm2, %v2623_v36, 0 }
 0x17c   : > { %1256 = vperm.xlu1 %2622, %v1182_v33   ;;  %1246 = vperm.xlu0 %2621, %v1180_v34   ;;  %v2625_v41 = vld [vmem:[%s2880_s24] sm:$0xff]   ;;  %v1185_v42 = vld [vmem:[%s2875_s19 + $0x28] sm:$0xff]  ;;  %v2627_v45 = vld [vmem:[%s2880_s24 + $0x10] sm:$0xff]  }
 0x17d   : > { %2545 = vmatprep.subr.msk.bf16.mxu0 %vm1641_vm2, %v2623_v36  ;;  %2546 = vmatprep.subr.msk.bf16.mxu1 %vm1641_vm2, %v2623_v36  ;;  %v1184_v43 = vld [vmem:[%s2875_s19 + $0x20] sm:$0xff]  ;;  %v2626_v44 = vld [vmem:[%s2880_s24 + $0x8] sm:$0xff]   ;;  %v1187_v48 = vld [vmem:[%s2875_s19 + $0x38] sm:$0xff] }
 0x17e   : > { %2490 = vmatpush3.bf16.msra.mxu0 %v1643_v40  ;;  %2543 = vmatpush3.bf16.msra.mxu1 %v1643_v40  ;;  %v2629_v46 = vld [vmem:[%s2880_s24 + $0x40] sm:$0xff]   ;;  %v2630_v47 = vld [vmem:[%s2880_s24 + $0x48] sm:$0xff]   ;;  %v1186_v49 = vld [vmem:[%s2875_s19 + $0x30] sm:$0xff] }
 0x17f   : > { %2491 = vmatprep.subr.bf16.mxu0 %v2624_v39  ;;  %2493 = vmatprep.mubr.msk.bf16.mxu0 %vm1592_vm3, %v2625_v41  ;;  %v1189_v50 = vld [vmem:[%s2875_s19 + $0x48] sm:$0xff]  ;;  %v1188_v51 = vld [vmem:[%s2875_s19 + $0x40] sm:$0xff]  ;;  %v2628_v52 = vld [vmem:[%s2880_s24 + $0x18] sm:$0xff]  }
 0x180   : > { %1261 = vperm.xlu1 %2622, %v1183_v37   ;;  %1251 = vperm.xlu0 %2621, %v1181_v38   ;;  %v2633_v53 = vld [vmem:[%s2880_s24 + $0x50] sm:$0xff]   ;;  %v2631_v54 = vld [vmem:[%s2880_s24 + $0x20] sm:$0xff]   ;;  %v2634_v55 = vld [vmem:[%s2880_s24 + $0x58] sm:$0xff]  }
 0x181   : > { %2542 = vmatprep.subr.bf16.mxu1 %v2624_v39  ;;  %2509 = vmatprep.mubr.msk.bf16.mxu1 %vm1592_vm3, %v2629_v46  ;;  %v1191_v56 = vld [vmem:[%s2875_s19 + $0x58] sm:$0xff]  ;;  %v1190_v57 = vld [vmem:[%s2875_s19 + $0x50] sm:$0xff]  ;;  %v2637_v58 = vld [vmem:[%s2880_s24 + $0x60] sm:$0xff]  }
 0x182   : > { %2492 = vmatpush3.bf16.msra.mxu0 %v2624_v39  ;;  %2544 = vmatpush3.bf16.msra.mxu1 %v2624_v39  ;;  %v1193_v59 = vld [vmem:[%s2875_s19 + $0x68] sm:$0xff]  ;;  %v1192_v60 = vld [vmem:[%s2875_s19 + $0x60] sm:$0xff]  ;;  %v2635_v62 = vld [vmem:[%s2880_s24 + $0x30] sm:$0xff]  }
 0x183   : > { %v2632_v61 = vld [vmem:[%s2880_s24 + $0x28] sm:$0xff]   ;;  %v2639_v0 = vld [vmem:[%s2880_s24 + $0x70] sm:$0xff]   ;;  %v1195_v1 = vld [vmem:[%s2875_s19 + $0x78] sm:$0xff] }
 0x184   : > { %1271 = vperm.xlu1 %2622, %v1185_v42   ;;  %1266 = vperm.xlu0 %2621, %v1184_v43   ;;  %v2638_v63 = vld [vmem:[%s2880_s24 + $0x68] sm:$0xff]   ;;  %v1194_v2 = vld [vmem:[%s2875_s19 + $0x70] sm:$0xff]  ;;  %v1196_v4 = vld [vmem:[%s2875_s19 + $0x80] sm:$0xff] }
 0x185   : > { %2494 = vmatmul.mubr.msk.bf16.vlgmr.msra.gmra.mxu0 %vm1592_vm3, %v2626_v44  ;;  %2510 = vmatmul.mubr.msk.bf16.vlgmr.msra.gmra.mxu1 %vm1592_vm3, %v2630_v47  ;;  %v1197_v3 = vld [vmem:[%s2875_s19 + $0x88] sm:$0xff]  ;;  %v2636_v5 = vld [vmem:[%s2880_s24 + $0x38] sm:$0xff]   ;;  %v1198_v8 = vld [vmem:[%s2875_s19 + $0x90] sm:$0xff] }
 0x186   : > { %2497 = vmatprep.mubr.msk.bf16.mxu0 %vm1592_vm3, %v2627_v45  ;;  %2513 = vmatprep.mubr.msk.bf16.mxu1 %vm1592_vm3, %v2633_v53  ;;  %v2640_v6 = vld [vmem:[%s2880_s24 + $0x78] sm:$0xff]   ;;  %v1201_v9 = vld [vmem:[%s2875_s19 + $0xa8] sm:$0xff]  ;;  %v1200_v10 = vld [vmem:[%s2875_s19 + $0xa0] sm:$0xff] }
 0x187   : > { %v1199_v7 = vld [vmem:[%s2875_s19 + $0x98] sm:$0xff]  ;;  %v1202_v12 = vld [vmem:[%s2875_s19 + $0xb0] sm:$0xff]  ;;  %v1205_v13 = vld [vmem:[%s2875_s19 + $0xc8] sm:$0xff] }
 0x188   : > { %1281 = vperm.xlu1 %2622, %v1187_v48   ;;  %1276 = vperm.xlu0 %2621, %v1186_v49   ;;  %v1203_v11 = vld [vmem:[%s2875_s19 + $0xb8] sm:$0xff]  ;;  %v1204_v14 = vld [vmem:[%s2875_s19 + $0xc0] sm:$0xff]  ;;  %v1206_v16 = vld [vmem:[%s2875_s19 + $0xd0] sm:$0xff] }
 0x189   : > { %v1207_v15 = vld [vmem:[%s2875_s19 + $0xd8] sm:$0xff]  ;;  %v1209_v17 = vld [vmem:[%s2875_s19 + $0xe8] sm:$0xff]  ;;  %v1208_v18 = vld [vmem:[%s2875_s19 + $0xe0] sm:$0xff] }
 0x18a   : > { %v1211_v19 = vld [vmem:[%s2875_s19 + $0xf8] sm:$0xff]  ;;  %v1210_v20 = vld [vmem:[%s2875_s19 + $0xf0] sm:$0xff]  ;;  %v1437_v21 = vld [vmem:[%s2885_s0 + $0x8] sm:$0xff] }
 0x18b   : > { %v1436_v22 = vld [vmem:[%s2885_s0] sm:$0xff]  ;;  %v1439_v23 = vld [vmem:[%s2885_s0 + $0x18] sm:$0xff]  ;;  %v1438_v24 = vld [vmem:[%s2885_s0 + $0x10] sm:$0xff] }
 0x18c   : > { %1291 = vperm.xlu1 %2622, %v1189_v50   ;;  %1286 = vperm.xlu0 %2621, %v1188_v51   ;;  %v1441_v25 = vld [vmem:[%s2885_s0 + $0x28] sm:$0xff]  ;;  %v1440_v26 = vld [vmem:[%s2885_s0 + $0x20] sm:$0xff]  ;;  %v1443_v27 = vld [vmem:[%s2885_s0 + $0x38] sm:$0xff] }
 0x18d   : > { %2498 = vmatmul.mubr.msk.bf16.gmra.mxu0 %vm1592_vm3, %v2628_v52  ;;  %2514 = vmatmul.mubr.msk.bf16.gmra.mxu1 %vm1592_vm3, %v2634_v55  ;;  %v1442_v28 = vld [vmem:[%s2885_s0 + $0x30] sm:$0xff]  ;;  %v1445_v29 = vld [vmem:[%s2885_s0 + $0x48] sm:$0xff]  ;;  %v1444_v30 = vld [vmem:[%s2885_s0 + $0x40] sm:$0xff] }
 0x18e   : > { %2501 = vmatprep.mubr.msk.bf16.mxu0 %vm1592_vm3, %v2631_v54  ;;  %2517 = vmatprep.mubr.msk.bf16.mxu1 %vm1592_vm3, %v2637_v58  ;;  %v1447_v31 = vld [vmem:[%s2885_s0 + $0x58] sm:$0xff]  ;;  %v1446_v32 = vld [vmem:[%s2885_s0 + $0x50] sm:$0xff]  ;;  %v1449_v33 = vld [vmem:[%s2885_s0 + $0x68] sm:$0xff] }
 0x18f   : > { %v1448_v34 = vld [vmem:[%s2885_s0 + $0x60] sm:$0xff]  ;;  %v1451_v35 = vld [vmem:[%s2885_s0 + $0x78] sm:$0xff]  ;;  %v1450_v36 = vld [vmem:[%s2885_s0 + $0x70] sm:$0xff] }
 0x190   : > { %1301 = vperm.xlu1 %2622, %v1191_v56   ;;  %1296 = vperm.xlu0 %2621, %v1190_v57   ;;  %v1453_v37 = vld [vmem:[%s2885_s0 + $0x88] sm:$0xff]  ;;  %v1452_v38 = vld [vmem:[%s2885_s0 + $0x80] sm:$0xff]  ;;  %v1455_v39 = vld [vmem:[%s2885_s0 + $0x98] sm:$0xff] }
 0x191   : > { %v1454_v40 = vld [vmem:[%s2885_s0 + $0x90] sm:$0xff]  ;;  %v1457_v41 = vld [vmem:[%s2885_s0 + $0xa8] sm:$0xff]  ;;  %v1456_v42 = vld [vmem:[%s2885_s0 + $0xa0] sm:$0xff] }
 0x192   : > { %v1459_v43 = vld [vmem:[%s2885_s0 + $0xb8] sm:$0xff]  ;;  %v1458_v44 = vld [vmem:[%s2885_s0 + $0xb0] sm:$0xff]  ;;  %v1461_v45 = vld [vmem:[%s2885_s0 + $0xc8] sm:$0xff] }
 0x193   : > { %v1460_v46 = vld [vmem:[%s2885_s0 + $0xc0] sm:$0xff]  ;;  %v1463_v47 = vld [vmem:[%s2885_s0 + $0xd8] sm:$0xff]  ;;  %v1462_v48 = vld [vmem:[%s2885_s0 + $0xd0] sm:$0xff] }
 0x194   : > { %1311 = vperm.xlu1 %2622, %v1193_v59   ;;  %1306 = vperm.xlu0 %2621, %v1192_v60   ;;  %v1465_v49 = vld [vmem:[%s2885_s0 + $0xe8] sm:$0xff]  ;;  %v1464_v50 = vld [vmem:[%s2885_s0 + $0xe0] sm:$0xff]  ;;  %v1467_v51 = vld [vmem:[%s2885_s0 + $0xf8] sm:$0xff] }
 0x195   : > { %2502 = vmatmul.mubr.msk.bf16.gmra.mxu0 %vm1592_vm3, %v2632_v61  ;;  %2518 = vmatmul.mubr.msk.bf16.gmra.mxu1 %vm1592_vm3, %v2638_v63  ;;  %v1466_v52 = vld [vmem:[%s2885_s0 + $0xf0] sm:$0xff] }
 0x196   : > { %2505 = vmatprep.mubr.msk.bf16.mxu0 %vm1592_vm3, %v2635_v62  ;;  %2521 = vmatprep.mubr.msk.bf16.mxu1 %vm1592_vm3, %v2639_v0 }
 0x198   : > { %1321 = vperm.xlu1 %2622, %v1195_v1   ;;  %1316 = vperm.xlu0 %2621, %v1194_v2  }
 0x19c   : > { %1331 = vperm.xlu1 %2622, %v1197_v3   ;;  %1326 = vperm.xlu0 %2621, %v1196_v4  }
 0x19d   : > { %2506 = vmatmul.mubr.msk.bf16.gmra.mxu0 %vm1592_vm3, %v2636_v5  ;;  %2522 = vmatmul.mubr.msk.bf16.gmra.mxu1 %vm1592_vm3, %v2640_v6 }
 0x1a0   : > { %1341 = vperm.xlu1 %2622, %v1199_v7   ;;  %1336 = vperm.xlu0 %2621, %v1198_v8  }
 0x1a4   : > { %1351 = vperm.xlu1 %2622, %v1201_v9   ;;  %1346 = vperm.xlu0 %2621, %v1200_v10  }
 0x1a8   : > { %1361 = vperm.xlu1 %2622, %v1203_v11   ;;  %1356 = vperm.xlu0 %2621, %v1202_v12  }
 0x1ac   : > { %1371 = vperm.xlu1 %2622, %v1205_v13   ;;  %1366 = vperm.xlu0 %2621, %v1204_v14  }
 0x1b0   : > { %1381 = vperm.xlu1 %2622, %v1207_v15   ;;  %1376 = vperm.xlu0 %2621, %v1206_v16  }
 0x1b4   : > { %1391 = vperm.xlu1 %2622, %v1209_v17   ;;  %1386 = vperm.xlu0 %2621, %v1208_v18  }
 0x1b8   : > { %1401 = vperm.xlu1 %2622, %v1211_v19   ;;  %1396 = vperm.xlu0 %2621, %v1210_v20  }
 0x1bc   : > { %1813 = vperm.xlu1 %2622, %v1437_v21   ;;  %1808 = vperm.xlu0 %2621, %v1436_v22  }
 0x1c0   : > { %1823 = vperm.xlu1 %2622, %v1439_v23   ;;  %1818 = vperm.xlu0 %2621, %v1438_v24  }
 0x1c4   : > { %1833 = vperm.xlu1 %2622, %v1441_v25   ;;  %1828 = vperm.xlu0 %2621, %v1440_v26  }
 0x1c8   : > { %1843 = vperm.xlu1 %2622, %v1443_v27   ;;  %1838 = vperm.xlu0 %2621, %v1442_v28   ;;  %v1214_v27 = vld [vmem:[%s2890_s13 + $0x10] sm:$0xff] }
 0x1cc   : > { %1853 = vperm.xlu1 %2622, %v1445_v29   ;;  %1848 = vperm.xlu0 %2621, %v1444_v30   ;;  %v1212_v30 = vld [vmem:[%s2890_s13] sm:$0xff] }
 0x1d0   : > { %1863 = vperm.xlu1 %2622, %v1447_v31   ;;  %1858 = vperm.xlu0 %2621, %v1446_v32  }
 0x1d4   : > { %1873 = vperm.xlu1 %2622, %v1449_v33   ;;  %1868 = vperm.xlu0 %2621, %v1448_v34  }
 0x1d8   : > { %1883 = vperm.xlu1 %2622, %v1451_v35   ;;  %1878 = vperm.xlu0 %2621, %v1450_v36   ;;  %v1215_v35 = vld [vmem:[%s2890_s13 + $0x18] sm:$0xff] }
 0x1dc   : > { %1893 = vperm.xlu1 %2622, %v1453_v37   ;;  %1888 = vperm.xlu0 %2621, %v1452_v38  }
 0x1e0   : > { %1903 = vperm.xlu1 %2622, %v1455_v39   ;;  %1898 = vperm.xlu0 %2621, %v1454_v40   ;;  %v1213_v39 = vld [vmem:[%s2890_s13 + $0x8] sm:$0xff] }
 0x1e4   : > { %1913 = vperm.xlu1 %2622, %v1457_v41   ;;  %1908 = vperm.xlu0 %2621, %v1456_v42  }
 0x1e8   : > { %1923 = vperm.xlu1 %2622, %v1459_v43   ;;  %1918 = vperm.xlu0 %2621, %v1458_v44  }
 0x1ec   : > { %1933 = vperm.xlu1 %2622, %v1461_v45   ;;  %1928 = vperm.xlu0 %2621, %v1460_v46   ;;  %v1218_v46 = vld [vmem:[%s2890_s13 + $0x30] sm:$0xff] }
 0x1f0   : > { %1943 = vperm.xlu1 %2622, %v1463_v47   ;;  %1938 = vperm.xlu0 %2621, %v1462_v48  }
 0x1f4   : > { %1953 = vperm.xlu1 %2622, %v1465_v49   ;;  %1948 = vperm.xlu0 %2621, %v1464_v50  }
 0x1f7   : > { %v1257_v53 = vpop.permute.xlu1 %1256  ;;  %v1247_v54 = vpop.permute.xlu0 %1246 }
 0x1f8   : > { %1963 = vperm.xlu1 %2622, %v1467_v51   ;;  %1958 = vperm.xlu0 %2621, %v1466_v52   ;;  %v1406_v32 = vmul.f32 %v1257_v53, %v1214_v27  ;;  %v1404_v38 = vmul.f32 %v1247_v54, %v1212_v30  ;;  %v1216_v54 = vld [vmem:[%s2890_s13 + $0x20] sm:$0xff] }
 0x1fb   : > { %v1262_v55 = vpop.permute.xlu1 %1261  ;;  %v1252_v56 = vpop.permute.xlu0 %1251 }
 0x1fc   : > { %v1407_v45 = vmul.f32 %v1262_v55, %v1215_v35  ;;  %v1405_v51 = vmul.f32 %v1252_v56, %v1213_v39  ;;  %v1217_v56 = vld [vmem:[%s2890_s13 + $0x28] sm:$0xff] }
 0x1ff   : > { %v3190_v57 = vpop.permute.xlu1 %1271  ;;  %v3192_v58 = vpop.permute.xlu0 %1266 }
 0x203   : > { %v3194_v59 = vpop.permute.xlu1 %1281  ;;  %v3196_v60 = vpop.permute.xlu0 %1276 }
 0x207   : > { %v3198_v61 = vpop.permute.xlu1 %1291  ;;  %v3200_v62 = vpop.permute.xlu0 %1286 }
 0x20b   : > { %v3202_v63 = vpop.permute.xlu1 %1301  ;;  %v3204_v0 = vpop.permute.xlu0 %1296 }
 0x20f   : > { %v3206_v1 = vpop.permute.xlu1 %1311  ;;  %v3208_v2 = vpop.permute.xlu0 %1306 }
 0x213   : > { %v3210_v3 = vpop.permute.xlu1 %1321  ;;  %v3212_v4 = vpop.permute.xlu0 %1316 }
 0x217   : > { %v3214_v5 = vpop.permute.xlu1 %1331  ;;  %v3216_v6 = vpop.permute.xlu0 %1326 }
 0x21b   : > { %v3218_v7 = vpop.permute.xlu1 %1341  ;;  %v3220_v8 = vpop.permute.xlu0 %1336 }
 0x21f   : > { %v3222_v9 = vpop.permute.xlu1 %1351  ;;  %v3224_v10 = vpop.permute.xlu0 %1346 }
 0x223   : > { %v3226_v11 = vpop.permute.xlu1 %1361  ;;  %v3228_v12 = vpop.permute.xlu0 %1356 }
 0x227   : > { %v3230_v13 = vpop.permute.xlu1 %1371  ;;  %v3232_v14 = vpop.permute.xlu0 %1366 }
 0x22b   : > { %v3234_v15 = vpop.permute.xlu1 %1381  ;;  %v3236_v16 = vpop.permute.xlu0 %1376 }
 0x22f   : > { %v3238_v17 = vpop.permute.xlu1 %1391  ;;  %v3240_v18 = vpop.permute.xlu0 %1386 }
 0x233   : > { %v3242_v19 = vpop.permute.xlu1 %1401  ;;  %v3244_v20 = vpop.permute.xlu0 %1396 }
 0x234   : > { %3487 = vst [vmem:[#allocation3_spill] sm:$0xff] %v3244_v20 }
 0x237   : > { %v1814_v21 = vpop.permute.xlu1 %1813  ;;  %v1809_v22 = vpop.permute.xlu0 %1808 }
 0x23b   : > { %v1824_v23 = vpop.permute.xlu1 %1823  ;;  %v1819_v24 = vpop.permute.xlu0 %1818 }
 0x23f   : > { %v3246_v25 = vpop.permute.xlu1 %1833  ;;  %v1829_v26 = vpop.permute.xlu0 %1828 }
 0x243   : > { %v3249_v28 = vpop.permute.xlu1 %1843  ;;  %v1839_v29 = vpop.permute.xlu0 %1838 }
 0x245   : > { %v2495_v31 = vpop.f32.mrf.mxu0  ;;  %v3252_v34 = vpop.f32.mrf.mxu1 }
 0x246   : > { %v1968_v33 = vmul.f32 %v2495_v31, %v1819_v24 }
 0x247   : > { %v1679_v36 = vpop.f32.mrf.mxu0  ;;  %v3255_v37 = vpop.permute.xlu1 %1853 }
 0x248   : > { %v2000_v40 = vadd.f32 %v1968_v33, %v1406_v32  ;;  %v1966_v41 = vmul.f32 %v1809_v22, %v1679_v36  ;;  %v3258_v42 = vpop.permute.xlu0 %1848  ;;  %v3260_v43 = vpop.f32.mrf.mxu1  ;;  %v1219_v33 = vld [vmem:[%s2890_s13 + $0x38] sm:$0xff] }
 0x249   : > { %v2496_v44 = vpop.f32.mrf.mxu0 }
 0x24a   : > { %v2032_v47 = vmul.f32 0.5, %v2000_v40  ;;  %v1998_v48 = vadd.f32 %v1966_v41, %v1404_v38  ;;  %v1969_v49 = vmul.f32 %v2496_v44, %v1824_v23  ;;  %v3263_v50 = vpop.f32.mrf.mxu1  ;;  %v1410_v23 = vmul.f32 %v3196_v60, %v1218_v46  ;;  %v1221_v41 = vld [vmem:[%s2890_s13 + $0x48] sm:$0xff]  ;;  %v1223_v46 = vld [vmem:[%s2890_s13 + $0x58] sm:$0xff] }
 0x24b   : > { %v1682_v52 = vpop.f32.mrf.mxu0  ;;  %v3265_v53 = vpop.permute.xlu1 %1863  ;;  %v1408_v40 = vmul.f32 %v3192_v58, %v1216_v54  ;;  %v1409_v54 = vmul.f32 %v3190_v57, %v1217_v56 }
 0x24c   : > { %v2064_v22 = vmax.f32 %v2032_v47, 0.0  ;;  %v2030_v24 = vmul.f32 0.5, %v1998_v48  ;;  %v2001_v27 = vadd.f32 %v1969_v49, %v1407_v45  ;;  %v1967_v30 = vmul.f32 %v1814_v21, %v1682_v52  ;;  %v3268_v55 = vpop.permute.xlu0 %1858  ;;  %v3270_v31 = vpop.f32.mrf.mxu1  ;;  %v1220_v45 = vld [vmem:[%s2890_s13 + $0x40] sm:$0xff]  ;;  %v1222_v47 = vld [vmem:[%s2890_s13 + $0x50] sm:$0xff] }
 0x24d   : > { %v2499_v32 = vpop.f32.mrf.mxu0  ;;  %v1412_v56 = vmul.f32 %v3200_v62, %v1220_v45 }
 0x24e   : > { %2096 = vst.msk [vmem:[%s2890_s13 + $0x10] sm:$0xff] %vm1143_vm1, %v2064_v22  ;;  %v2062_v35 = vmax.f32 %v2030_v24, 0.0  ;;  %v2033_v36 = vmul.f32 0.5, %v2001_v27  ;;  %v1999_v38 = vadd.f32 %v1967_v30, %v1405_v51  ;;  %v1972_v39 = vmul.f32 %v2499_v32, %v1839_v29  ;;  %v3277_v21 = vpop.f32.mrf.mxu1  ;;  %v1225_v24 = vld [vmem:[%s2890_s13 + $0x68] sm:$0xff]  ;;  %v1224_v30 = vld [vmem:[%s2890_s13 + $0x60] sm:$0xff]  ;;  %v1227_v32 = vld [vmem:[%s2890_s13 + $0x78] sm:$0xff] }
 0x24f   : > { %v1695_v44 = vpop.f32.mrf.mxu0  ;;  %v3281_v60 = vpop.permute.xlu1 %1873  ;;  %v1411_v22 = vmul.f32 %v3194_v59, %v1219_v33  ;;  %v3304_v59 = vmul.f32 %v3198_v61, %v1221_v41  ;;  %v3308_v33 = vmul.f32 %v3202_v63, %v1223_v46 }
 0x250   : > { %2094 = vst.msk [vmem:[%s2890_s13] sm:$0xff] %vm1143_vm1, %v2062_v35  ;;  %v2065_v48 = vmax.f32 %v2033_v36, 0.0  ;;  %v2031_v29 = vmul.f32 0.5, %v1999_v38  ;;  %v2004_v49 = vadd.f32 %v1972_v39, %v1410_v23  ;;  %v1970_v51 = vmul.f32 %v1829_v26, %v1695_v44  ;;  %v3288_v52 = vpop.permute.xlu0 %1868  ;;  %v3290_v58 = vpop.f32.mrf.mxu1  ;;  %v1226_v35 = vld [vmem:[%s2890_s13 + $0x70] sm:$0xff]  ;;  %v1229_v44 = vld [vmem:[%s2890_s13 + $0x88] sm:$0xff] }
 0x251   : > { %v2500_v27 = vpop.f32.mrf.mxu0  ;;  %v1414_v39 = vmul.f32 %v3204_v0, %v1222_v47  ;;  %v3323_v0 = vmul.f32 %v3206_v1, %v1225_v24  ;;  %v3326_v47 = vmul.f32 %v3208_v2, %v1224_v30 }
 0x252   : > { %2097 = vst.msk [vmem:[%s2890_s13 + $0x18] sm:$0xff] %vm1143_vm1, %v2065_v48  ;;  %v2063_v26 = vmax.f32 %v2031_v29, 0.0  ;;  %v2036_v23 = vmul.f32 0.5, %v2004_v49  ;;  %v2002_v36 = vadd.f32 %v1970_v51, %v1408_v40  ;;  %v1973_v38 = vmul.f32 %v2500_v27, %v3249_v28  ;;  %v3301_v57 = vpop.f32.mrf.mxu1  ;;  %v1228_v40 = vld [vmem:[%s2890_s13 + $0x80] sm:$0xff]  ;;  %v1231_v28 = vld [vmem:[%s2890_s13 + $0x98] sm:$0xff]  ;;  %v1230_v29 = vld [vmem:[%s2890_s13 + $0x90] sm:$0xff] }
 0x253   : > { %v1698_v48 = vpop.f32.mrf.mxu0  ;;  %v3312_v20 = vpop.permute.xlu1 %1883  ;;  %v3329_v49 = vmul.f32 %v3210_v3, %v1227_v32  ;;  %v3332_v51 = vmul.f32 %v3212_v4, %v1226_v35  ;;  %v1421_v3 = vmul.f32 %v3214_v5, %v1229_v44  ;;  %v1420_v4 = vmul.f32 %v3216_v6, %v1228_v40 }
 0x254   : > { %2095 = vst.msk [vmem:[%s2890_s13 + $0x8] sm:$0xff] %vm1143_vm1, %v2063_v26  ;;  %v2068_v61 = vmax.f32 %v2036_v23, 0.0  ;;  %v2034_v41 = vmul.f32 0.5, %v2002_v36  ;;  %v2005_v62 = vadd.f32 %v1973_v38, %v1411_v22  ;;  %v1971_v63 = vmul.f32 %v3246_v25, %v1698_v48  ;;  %v1879_v45 = vpop.permute.xlu0 %1878  ;;  %v3320_v46 = vpop.f32.mrf.mxu1  ;;  %v1233_v22 = vld [vmem:[%s2890_s13 + $0xa8] sm:$0xff]  ;;  %v1232_v25 = vld [vmem:[%s2890_s13 + $0xa0] sm:$0xff]  ;;  %v1235_v38 = vld [vmem:[%s2890_s13 + $0xb8] sm:$0xff] }
 0x255   : > { %v2503_v27 = vpop.f32.mrf.mxu0  ;;  %v1423_v32 = vmul.f32 %v3218_v7, %v1231_v28  ;;  %v1422_v35 = vmul.f32 %v3220_v8, %v1230_v29  ;;  %v1234_v48 = vld [vmem:[%s2890_s13 + $0xb0] sm:$0xff]  ;;  %v1425_v6 = vmul.f32 %v3222_v9, %v1233_v22  ;;  %v1424_v7 = vmul.f32 %v3224_v10, %v1232_v25 }
 0x256   : > { %2100 = vst.msk [vmem:[%s2890_s13 + $0x30] sm:$0xff] %vm1143_vm1, %v2068_v61  ;;  %v2066_v26 = vmax.f32 %v2034_v41, 0.0  ;;  %v2037_v1 = vmul.f32 0.5, %v2005_v62  ;;  %v2003_v24 = vadd.f32 %v1971_v63, %v1409_v54  ;;  %v1976_v2 = vmul.f32 %v2503_v27, %v3268_v55  ;;  %v3339_v30 = vpop.f32.mrf.mxu1 }
 0x257   : > { %v1711_v23 = vpop.f32.mrf.mxu0  ;;  %v1894_v36 = vpop.permute.xlu1 %1893  ;;  %v3362_v27 = vmul.f32 %v3226_v11, %v1235_v38  ;;  %v3365_v9 = vmul.f32 %v3228_v12, %v1234_v48 }
 0x258   : > { %2098 = vst.msk [vmem:[%s2890_s13 + $0x20] sm:$0xff] %vm1143_vm1, %v2066_v26  ;;  %v2069_v54 = vmax.f32 %v2037_v1, 0.0  ;;  %v2035_v61 = vmul.f32 0.5, %v2003_v24  ;;  %v2008_v55 = vadd.f32 %v1976_v2, %v1414_v39  ;;  %v1974_v41 = vmul.f32 %v3258_v42, %v1711_v23  ;;  %v1889_v62 = vpop.permute.xlu0 %1888  ;;  %v3350_v5 = vpop.f32.mrf.mxu1 }
 0x259   : > { %v1983_v8 = vmul.f32 %v1894_v36, %v3270_v31  ;;  %v1982_v44 = vmul.f32 %v1889_v62, %v3260_v43  ;;  %v2504_v40 = vpop.f32.mrf.mxu0 }
 0x25a   : > { %2101 = vst.msk [vmem:[%s2890_s13 + $0x38] sm:$0xff] %vm1143_vm1, %v2069_v54  ;;  %v2067_v28 = vmax.f32 %v2035_v61, 0.0  ;;  %v2040_v29 = vmul.f32 0.5, %v2008_v55  ;;  %v2006_v39 = vadd.f32 %v1974_v41, %v1412_v56  ;;  %v1977_v42 = vmul.f32 %v2504_v40, %v3265_v53  ;;  %v3359_v63 = vpop.f32.mrf.mxu1 }
 0x25b   : > { %v2015_v10 = vadd.f32 %v1983_v8, %v1421_v3  ;;  %v2014_v31 = vadd.f32 %v1982_v44, %v1420_v4  ;;  %v1714_v43 = vpop.f32.mrf.mxu0  ;;  %v1904_v22 = vpop.permute.xlu1 %1903 }
 0x25c   : > { %2099 = vst.msk [vmem:[%s2890_s13 + $0x28] sm:$0xff] %vm1143_vm1, %v2067_v28  ;;  %v2072_v25 = vmax.f32 %v2040_v29, 0.0  ;;  %v2038_v26 = vmul.f32 0.5, %v2006_v39  ;;  %v2009_v56 = vadd.f32 %v1977_v42, %v3308_v33  ;;  %v1975_v53 = vmul.f32 %v3255_v37, %v1714_v43  ;;  %v1899_v1 = vpop.permute.xlu0 %1898  ;;  %v1778_v38 = vpop.f32.mrf.mxu1 }
 0x25d   : > { %v2047_v24 = vmul.f32 0.5, %v2015_v10  ;;  %v2046_v11 = vmul.f32 0.5, %v2014_v31  ;;  %v1985_v12 = vmul.f32 %v3263_v50, %v1904_v22  ;;  %v1984_v2 = vmul.f32 %v3252_v34, %v1899_v1  ;;  %v2507_v3 = vpop.f32.mrf.mxu0 }
 0x25e   : > { %2104 = vst.msk [vmem:[%s2890_s13 + $0x50] sm:$0xff] %vm1143_vm1, %v2072_v25  ;;  %v2070_v4 = vmax.f32 %v2038_v26, 0.0  ;;  %v2041_v23 = vmul.f32 0.5, %v2009_v56  ;;  %v2007_v36 = vadd.f32 %v1975_v53, %v3304_v59  ;;  %v1980_v33 = vmul.f32 %v2507_v3, %v1879_v45  ;;  %v3390_v39 = vpop.f32.mrf.mxu1  ;;  %v1237_v56 = vld [vmem:[%s2890_s13 + $0xc8] sm:$0xff] }
 0x25f   : > { %v2079_v37 = vmax.f32 %v2047_v24, 0.0  ;;  %v2078_v48 = vmax.f32 %v2046_v11, 0.0  ;;  %v2017_v54 = vadd.f32 %v1985_v12, %v1423_v32  ;;  %v2016_v61 = vadd.f32 %v1984_v2, %v1422_v35  ;;  %v1727_v55 = vpop.f32.mrf.mxu0  ;;  %v1914_v50 = vpop.permute.xlu1 %1913  ;;  %v1236_v24 = vld [vmem:[%s2890_s13 + $0xc0] sm:$0xff] }
 0x260   : > { %2102 = vst.msk [vmem:[%s2890_s13 + $0x40] sm:$0xff] %vm1143_vm1, %v2070_v4  ;;  %v2073_v34 = vmax.f32 %v2041_v23, 0.0  ;;  %v2039_v41 = vmul.f32 0.5, %v2007_v36  ;;  %v2012_v62 = vadd.f32 %v1980_v33, %v3332_v51  ;;  %v1978_v8 = vmul.f32 %v3288_v52, %v1727_v55  ;;  %v1909_v44 = vpop.permute.xlu0 %1908 }
 0x261   : > { %2111 = vst.msk [vmem:[%s2890_s13 + $0x88] sm:$0xff] %vm1143_vm1, %v2079_v37  ;;  %2110 = vst.msk [vmem:[%s2890_s13 + $0x80] sm:$0xff] %vm1143_vm1, %v2078_v48  ;;  %v2049_v59 = vmul.f32 0.5, %v2017_v54  ;;  %v2048_v45 = vmul.f32 0.5, %v2016_v61  ;;  %v1987_v32 = vmul.f32 %v1914_v50, %v3320_v46  ;;  %v1986_v35 = vmul.f32 %v1909_v44, %v3290_v58  ;;  %v2508_v40 = vpop.f32.mrf.mxu0  ;;  %v1239_v54 = vld [vmem:[%s2890_s13 + $0xd8] sm:$0xff] }
 0x262   : > { %2105 = vst.msk [vmem:[%s2890_s13 + $0x58] sm:$0xff] %vm1143_vm1, %v2073_v34  ;;  %v2071_v28 = vmax.f32 %v2039_v41, 0.0  ;;  %v2044_v29 = vmul.f32 0.5, %v2012_v62  ;;  %v2010_v52 = vadd.f32 %v1978_v8, %v3326_v47  ;;  %v1981_v51 = vmul.f32 %v2508_v40, %v3312_v20 }
 0x263   : > { %v2081_v42 = vmax.f32 %v2049_v59, 0.0  ;;  %v2080_v10 = vmax.f32 %v2048_v45, 0.0  ;;  %v2019_v31 = vadd.f32 %v1987_v32, %v1425_v6  ;;  %v2018_v46 = vadd.f32 %v1986_v35, %v1424_v7  ;;  %v1730_v58 = vpop.f32.mrf.mxu0  ;;  %v1924_v43 = vpop.permute.xlu1 %1923  ;;  %v1241_v32 = vld [vmem:[%s2890_s13 + $0xe8] sm:$0xff] }
 0x264   : > { %2103 = vst.msk [vmem:[%s2890_s13 + $0x48] sm:$0xff] %vm1143_vm1, %v2071_v28  ;;  %v2076_v22 = vmax.f32 %v2044_v29, 0.0  ;;  %v2042_v25 = vmul.f32 0.5, %v2010_v52  ;;  %v2013_v47 = vadd.f32 %v1981_v51, %v3329_v49  ;;  %v1979_v26 = vmul.f32 %v3281_v60, %v1730_v58  ;;  %v1919_v20 = vpop.permute.xlu0 %1918 }
 0x265   : > { %2113 = vst.msk [vmem:[%s2890_s13 + $0x98] sm:$0xff] %vm1143_vm1, %v2081_v42  ;;  %2112 = vst.msk [vmem:[%s2890_s13 + $0x90] sm:$0xff] %vm1143_vm1, %v2080_v10  ;;  %v2051_v6 = vmul.f32 0.5, %v2019_v31  ;;  %v2050_v7 = vmul.f32 0.5, %v2018_v46  ;;  %v1989_v53 = vmul.f32 %v3301_v57, %v1924_v43  ;;  %v1988_v1 = vmul.f32 %v3277_v21, %v1919_v20  ;;  %v1791_v21 = vpop.f32.mrf.mxu1  ;;  %v1243_v43 = vld [vmem:[%s2890_s13 + $0xf8] sm:$0xff] }
 0x266   : > { %2108 = vst.msk [vmem:[%s2890_s13 + $0x70] sm:$0xff] %vm1143_vm1, %v2076_v22  ;;  %v2074_v11 = vmax.f32 %v2042_v25, 0.0  ;;  %v2045_v49 = vmul.f32 0.5, %v2013_v47  ;;  %v2011_v60 = vadd.f32 %v1979_v26, %v3323_v0  ;;  %v1429_v23 = vmul.f32 %v3230_v13, %v1237_v56  ;;  %v1238_v13 = vld [vmem:[%s2890_s13 + $0xd0] sm:$0xff] }
 0x267   : > { %v2083_v12 = vmax.f32 %v2051_v6, 0.0  ;;  %v2082_v2 = vmax.f32 %v2050_v7, 0.0  ;;  %v2021_v3 = vadd.f32 %v1989_v53, %v3362_v27  ;;  %v2020_v4 = vadd.f32 %v1988_v1, %v3365_v9  ;;  %v1934_v57 = vpop.permute.xlu1 %1933  ;;  %v2524_v41 = vpop.f32.mrf.mxu1  ;;  %v1242_v25 = vld [vmem:[%s2890_s13 + $0xf0] sm:$0xff]  ;;  %v3488_v1 = vld [vmem:[#allocation3_spill] sm:$0xff] }
 0x268   : > { %2106 = vst.msk [vmem:[%s2890_s13 + $0x60] sm:$0xff] %vm1143_vm1, %v2074_v11  ;;  %v2077_v36 = vmax.f32 %v2045_v49, 0.0  ;;  %v2043_v33 = vmul.f32 0.5, %v2011_v60  ;;  %v1991_v37 = vmul.f32 %v1934_v57, %v1778_v38  ;;  %v1929_v48 = vpop.permute.xlu0 %1928  ;;  %v1428_v0 = vmul.f32 %v3232_v14, %v1236_v24 }
 0x269   : > { %2115 = vst.msk [vmem:[%s2890_s13 + $0xa8] sm:$0xff] %vm1143_vm1, %v2083_v12  ;;  %2114 = vst.msk [vmem:[%s2890_s13 + $0xa0] sm:$0xff] %vm1143_vm1, %v2082_v2  ;;  %v2053_v27 = vmul.f32 0.5, %v2021_v3  ;;  %v2052_v9 = vmul.f32 0.5, %v2020_v4  ;;  %v1990_v61 = vmul.f32 %v1929_v48, %v3350_v5  ;;  %v1431_v8 = vmul.f32 %v3234_v15, %v1239_v54  ;;  %v1240_v15 = vld [vmem:[%s2890_s13 + $0xe0] sm:$0xff]  ;;  %v1794_v51 = vpop.f32.mrf.mxu1 }
 0x26a   : > { %2109 = vst.msk [vmem:[%s2890_s13 + $0x78] sm:$0xff] %vm1143_vm1, %v2077_v36  ;;  %v2075_v38 = vmax.f32 %v2043_v33, 0.0  ;;  %v2023_v55 = vadd.f32 %v1991_v37, %v1429_v23  ;;  %v1430_v45 = vmul.f32 %v3236_v16, %v1238_v13  ;;  %v1433_v16 = vmul.f32 %v3238_v17, %v1241_v32 }
 0x26b   : > { %v2085_v50 = vmax.f32 %v2053_v27, 0.0  ;;  %v2084_v14 = vmax.f32 %v2052_v9, 0.0  ;;  %v2022_v34 = vadd.f32 %v1990_v61, %v1428_v0  ;;  %v1944_v62 = vpop.permute.xlu1 %1943  ;;  %v1432_v58 = vmul.f32 %v3240_v18, %v1240_v15 }
 0x26c   : > { %2107 = vst.msk [vmem:[%s2890_s13 + $0x68] sm:$0xff] %vm1143_vm1, %v2075_v38  ;;  %v2055_v44 = vmul.f32 0.5, %v2023_v55  ;;  %v1993_v5 = vmul.f32 %v3359_v63, %v1944_v62  ;;  %v1939_v59 = vpop.permute.xlu0 %1938  ;;  %v1435_v6 = vmul.f32 %v3242_v19, %v1243_v43  ;;  %v1434_v24 = vmul.f32 %v3488_v1, %v1242_v25 }
 0x26d   : > { %2117 = vst.msk [vmem:[%s2890_s13 + $0xb8] sm:$0xff] %vm1143_vm1, %v2085_v50  ;;  %2116 = vst.msk [vmem:[%s2890_s13 + $0xb0] sm:$0xff] %vm1143_vm1, %v2084_v14  ;;  %v2054_v35 = vmul.f32 0.5, %v2022_v34  ;;  %v1992_v40 = vmul.f32 %v3339_v30, %v1939_v59 }
 0x26e   : > { %v2087_v28 = vmax.f32 %v2055_v44, 0.0  ;;  %v2025_v29 = vadd.f32 %v1993_v5, %v1431_v8 }
 0x26f   : > { %v2086_v52 = vmax.f32 %v2054_v35, 0.0  ;;  %v2024_v63 = vadd.f32 %v1992_v40, %v1430_v45  ;;  %v1954_v42 = vpop.permute.xlu1 %1953 }
 0x270   : > { %2119 = vst.msk [vmem:[%s2890_s13 + $0xc8] sm:$0xff] %vm1143_vm1, %v2087_v28  ;;  %v2057_v10 = vmul.f32 0.5, %v2025_v29  ;;  %v1995_v31 = vmul.f32 %v1954_v42, %v1794_v51  ;;  %v1949_v46 = vpop.permute.xlu0 %1948 }
 0x271   : > { %2118 = vst.msk [vmem:[%s2890_s13 + $0xc0] sm:$0xff] %vm1143_vm1, %v2086_v52  ;;  %v2056_v30 = vmul.f32 0.5, %v2024_v63  ;;  %v1994_v22 = vmul.f32 %v1949_v46, %v1791_v21 }
 0x272   : > { %v2089_v47 = vmax.f32 %v2057_v10, 0.0  ;;  %v2027_v26 = vadd.f32 %v1995_v31, %v1433_v16 }
 0x273   : > { %v2088_v20 = vmax.f32 %v2056_v30, 0.0  ;;  %v2026_v17 = vadd.f32 %v1994_v22, %v1432_v58  ;;  %v1964_v56 = vpop.permute.xlu1 %1963 }
 0x274   : > { %2121 = vst.msk [vmem:[%s2890_s13 + $0xd8] sm:$0xff] %vm1143_vm1, %v2089_v47  ;;  %v2059_v7 = vmul.f32 0.5, %v2027_v26  ;;  %v1997_v18 = vmul.f32 %v2524_v41, %v1964_v56  ;;  %v1959_v53 = vpop.permute.xlu0 %1958 }
 0x275   : > { %2120 = vst.msk [vmem:[%s2890_s13 + $0xd0] sm:$0xff] %vm1143_vm1, %v2088_v20  ;;  %v2058_v11 = vmul.f32 0.5, %v2026_v17  ;;  %v1996_v49 = vmul.f32 %v3390_v39, %v1959_v53 }
 0x276   : > { %v2091_v60 = vmax.f32 %v2059_v7, 0.0  ;;  %v2029_v12 = vadd.f32 %v1997_v18, %v1435_v6 }
 0x277   : > { %v2090_v2 = vmax.f32 %v2058_v11, 0.0  ;;  %v2028_v3 = vadd.f32 %v1996_v49, %v1434_v24 }
 0x278   : > { %2123 = vst.msk [vmem:[%s2890_s13 + $0xe8] sm:$0xff] %vm1143_vm1, %v2091_v60  ;;  %v2061_v19 = vmul.f32 0.5, %v2029_v12 }
 0x279   : > { %2122 = vst.msk [vmem:[%s2890_s13 + $0xe0] sm:$0xff] %vm1143_vm1, %v2090_v2  ;;  %v2060_v4 = vmul.f32 0.5, %v2028_v3 }
 0x27a   : > { %v2093_v57 = vmax.f32 %v2061_v19, 0.0 }
 0x27b   : > { %v2092_v21 = vmax.f32 %v2060_v4, 0.0 }
 0x27c   : > { %2125 = vst.msk [vmem:[%s2890_s13 + $0xf8] sm:$0xff] %vm1143_vm1, %v2093_v57 }
 0x27d   : > { %2124 = vst.msk [vmem:[%s2890_s13 + $0xf0] sm:$0xff] %vm1143_vm1, %v2092_v21 }
 0x27e PF: > { %s16_s27 = sadd.s32 1, %s2695_s27   ;;  %s3489_s21 = smov %s2675_s22 }
 0x27f   : > { %p13_p0 = scmp.ge.s32.totalorder %s16_s27, 6   ;;  %s3490_s22 = smov %s2785_s10 }
 0x280   : > { %s3491_s23 = smov %s2687_s25  ;;  %s3492_s24 = smov %s2691_s26 }
 0x281   : > { %s3493_s25 = smov %s3496_s28  ;;  %s3494_s26 = smov %s3500_s29 }
 0x282   :  { %15 = sbr.rel (!%p13_p0) target bundleno = 6 (0x6), region = 140 }

</bundles_post_ra>
